<compile_context>
chip_gen: v7x
topology: tpu7x:2x2x1
jax: 0.10.0
libtpu: 0.0.40
codegen_flags: <defaults>
</compile_context>

<pallas_src>
import numpy as np
import jax
import jax.numpy as jnp
from jax import lax
from jax.experimental import pallas as pl
from jax.experimental.pallas import tpu as pltpu

# ---- module hyper-params: DownsampleBlock(in_channels=3, hid_channels=[32,32], n_centroids=8)
IN_CHANNELS = 3
HID1 = 32
HID2 = 32            # == hid_channels[-1] == attention q/k/out channels (num_heads=1)
N_CENTROIDS = 8
BN_EPS = 1e-5
LEAKY_SLOPE = 0.2
# Explicit scoped-VMEM budget: raises v5e's 16 MiB default, equals v6e/v7x defaults, and stays
# well inside v7x's 64 MiB physical VMEM.
VMEM_LIMIT_BYTES = 32 * 1024 * 1024


def _batch_group(b):
    """Batches per program for the (B*3, N) stacked-channel layout.

    The sublane block extent (group*3) must be a multiple of 8 or equal the full extent (B*3),
    so the only partial-extent choice is group == 8 (24 sublanes).  group == 8 also yields
    >= 2 grid steps (v7x 2-TensorCore split) whenever B >= 16; smaller / odd B falls back to a
    single full-extent program.
    """
    return 8 if b % 8 == 0 else b


# ----------------------------------------------------------------------------
# Kernel 1: farthest point sampling (DownsampleBlock.sample), batched over sublanes,
#           fused with the BatchNorm sufficient statistics (3x3 Gram + channel sums).
# ----------------------------------------------------------------------------
def _fps_kernel(x_ref, init_ref, idx_ref, gram_ref, rowsum_ref):
    # x_ref: (3*BT, N) f32 with rows ordered [b0c0, b0c1, b0c2, b1c0, ...]
    x = x_ref[...]
    r3, n = x.shape
    bt = r3 // 3
    s = idx_ref.shape[1]

    # --- BN sufficient statistics (replaces the old bn_stats kernel / second xyz HBM pass).
    # Full (3BT, 3BT) Gram of the block; the wrapper keeps only the per-batch 3x3 diagonal
    # blocks -> sum_{b,n} x[b,c,n] x[b,c',n].  Row sums give the per-channel sums.
    gram_ref[0] = lax.dot_general(x, x, (((1,), (1,)), ((), ())),
                                  preferred_element_type=jnp.float32)
    rowsum_ref[0] = jnp.sum(x, axis=1, keepdims=True)

    # --- channel-group matrices (group-sum G and expand E) built from iotas: the channel
    # grouping runs as tiny MXU matmuls, no strided / unaligned sublane slicing anywhere.
    rb = lax.broadcasted_iota(jnp.int32, (bt, r3), 0)
    cb = lax.broadcasted_iota(jnp.int32, (bt, r3), 1)
    gmat = ((cb >= 3 * rb) & (cb < 3 * rb + 3)).astype(jnp.float32)      # (BT, 3BT)
    rr = lax.broadcasted_iota(jnp.int32, (r3, bt), 0)
    cr = lax.broadcasted_iota(jnp.int32, (r3, bt), 1)
    emat = ((rr >= 3 * cr) & (rr < 3 * cr + 3)).astype(jnp.float32)      # (3BT, BT)

    iota_n = lax.broadcasted_iota(jnp.int32, (bt, n), 1)
    iota_s = lax.broadcasted_iota(jnp.int32, (bt, s), 1)
    sq = jnp.dot(gmat, x * x, preferred_element_type=jnp.float32)        # (BT, N) |x|^2 (hoisted)

    def body(i, carry):
        far, dist, idx_rows = carry                       # (BT,1) i32, (BT,N) f32, (BT,S) i32
        idx_rows = jnp.where(iota_s == i, far, idx_rows)                  # centroids[:, i] = far
        onehot = (iota_n == far).astype(jnp.float32)                      # (BT, N)
        onehot3 = jnp.dot(emat, onehot, preferred_element_type=jnp.float32)   # (3BT, N)
        c = jnp.sum(x * onehot3, axis=1, keepdims=True)                   # (3BT, 1) centroid xyz
        cross = jnp.dot(gmat, x * c, preferred_element_type=jnp.float32)  # (BT, N)  x . c
        csq = jnp.dot(gmat, c * c, preferred_element_type=jnp.float32)    # (BT, 1)  |c|^2
        d = sq - 2.0 * cross + csq
        dist = jnp.minimum(dist, d)
        # max + first-index argmax (matches torch.max tie-breaking), batched over sublane rows.
        mx = jnp.max(dist, axis=1, keepdims=True)
        far = jnp.min(jnp.where(dist == mx, iota_n, n),
                      axis=1, keepdims=True).astype(jnp.int32)
        return far, dist, idx_rows

    carry0 = (init_ref[...],
              jnp.full((bt, n), 1e10, jnp.float32),
              jnp.zeros((bt, s), jnp.int32))
    _, _, idx_rows = lax.fori_loop(0, s, body, carry0, unroll=True)       # 8 serial iterations
    idx_ref[...] = idx_rows


def fps(xyz2d, init_idx, batch, n_centroids=N_CENTROIDS):
    rows, N = xyz2d.shape
    C0 = rows // batch
    S = n_centroids
    BT = _batch_group(batch)
    Gn = batch // BT
    return pl.pallas_call(
        _fps_kernel,
        grid=(Gn,),
        in_specs=[pl.BlockSpec((BT * C0, N), lambda g: (g, 0)),
                  pl.BlockSpec((BT, 1), lambda g: (g, 0))],
        out_specs=[pl.BlockSpec((BT, S), lambda g: (g, 0)),
                   pl.BlockSpec((1, BT * C0, BT * C0), lambda g: (g, 0, 0)),
                   pl.BlockSpec((1, BT * C0, 1), lambda g: (g, 0, 0))],
        out_shape=[jax.ShapeDtypeStruct((batch, S), jnp.int32),
                   jax.ShapeDtypeStruct((Gn, BT * C0, BT * C0), jnp.float32),
                   jax.ShapeDtypeStruct((Gn, BT * C0, 1), jnp.float32)],
        compiler_params=pltpu.CompilerParams(
            dimension_semantics=("parallel",),
            vmem_limit_bytes=VMEM_LIMIT_BYTES),
    )(xyz2d, init_idx)


# ----------------------------------------------------------------------------
# Kernel 2: fused MLP-apply (conv1 -> BN -> LeakyReLU -> conv2) + Attention1d + residual.
# The (32, N) feature tensor never touches HBM; per-batch intermediates are bounded by the
# fori_loop body (one batch live at a time).
# ----------------------------------------------------------------------------
def _fused_mlp_attn_kernel(x_ref, xc_ref, scale_ref, shift_ref, w1_ref, w2_ref, b2_ref,
                           wq_ref, wkv_ref, wo_ref, o_ref):
    r3, n = x_ref.shape
    bb = r3 // 3
    h2 = w2_ref.shape[0]

    x = x_ref[...]          # (3*BB, N) stacked-channel xyz
    xc = xc_ref[...]        # (3*BB, S) stacked-channel centroid xyz
    scale = scale_ref[...]  # (H1, 1) BN folded scale
    shift = shift_ref[...]  # (H1, 1) BN folded shift
    w1 = w1_ref[...]
    w2 = w2_ref[...]
    b2 = b2_ref[...]
    wq = wq_ref[...]        # pre-scaled by 1/sqrt(H2) in the wrapper
    wkv = wkv_ref[...]      # fused [wk; wv]
    wo = wo_ref[...]

    row3 = lax.broadcasted_iota(jnp.int32, (3, r3), 0)
    col3 = lax.broadcasted_iota(jnp.int32, (3, r3), 1)

    def mlp(z):             # per-column conv1 -> BN affine -> LeakyReLU -> conv2 (k = 1)
        h = jnp.dot(w1, z, preferred_element_type=jnp.float32)
        hn = h * scale + shift                     # conv1's b1 cancels inside train-mode BN
        a = jnp.where(hn >= 0, hn, LEAKY_SLOPE * hn)
        return jnp.dot(w2, a, preferred_element_type=jnp.float32) + b2

    def body(b, carry):
        # Select this batch's 3 channel rows with a tiny (3, 3BB) iota-built matmul -- avoids
        # dynamic, non-8-aligned sublane slicing (rock-solid lowering, ~2% extra MXU MACs).
        sel = (col3 == 3 * b + row3).astype(jnp.float32)
        x_b = jnp.dot(sel, x, preferred_element_type=jnp.float32)       # (3, N)
        xc_b = jnp.dot(sel, xc, preferred_element_type=jnp.float32)     # (3, S)
        f = mlp(x_b)                                                     # (H2, N)  VMEM only
        cent = mlp(xc_b)                                                 # (H2, S)  == gathered feats
        q = jnp.dot(wq, cent, preferred_element_type=jnp.float32)        # (H2, S)
        kv = jnp.dot(wkv, f, preferred_element_type=jnp.float32)         # (2*H2, N) fused K/V
        k = kv[:h2, :]
        v = kv[h2:, :]
        logits = lax.dot_general(q, k, (((0,), (0,)), ((), ())),
                                 preferred_element_type=jnp.float32)     # (S, N), already 1/sqrt(C)
        m = jnp.max(logits, axis=1, keepdims=True)
        e = jnp.exp(logits - m)
        denom = jnp.sum(e, axis=1, keepdims=True)
        p = e * pl.reciprocal(denom, approx=True)                        # softmax over N (EUP recip)
        # attn^T = v . p^T : the small (S, N) operand is the transposed one, and the result feeds
        # wo directly in (H2, S) layout -- no (32, N) XLU transpose on the hot path.
        attn_t = lax.dot_general(v, p, (((1,), (1,)), ((), ())),
                                 preferred_element_type=jnp.float32)     # (H2, S)
        proj = jnp.dot(wo, attn_t, preferred_element_type=jnp.float32)   # (H2, S)
        o_ref[b] = cent + proj                                           # residual, per-batch store
        return carry

    lax.fori_loop(0, bb, body, 0)


def fused_mlp_attention(xyz2d, xc2d, scale, shift, w1, w2, b2, wq, wkv, wo, batch):
    rows, N = xyz2d.shape
    C0 = rows // batch
    S = xc2d.shape[1]
    H1 = w1.shape[0]
    H2 = w2.shape[0]
    BB = _batch_group(batch)
    # VMEM model (f32): xyz block double-buffered ~ 2*BB*3*N*4 B plus ONE batch of live
    # intermediates (x_b/h/a/f/kv/logits ~ 0.8 KB/point) -- with BB <= 8 this stays well under
    # VMEM_LIMIT_BYTES for point clouds up to ~20K points.
    # TODO(synk): for very large N, tile N inside this kernel with an online (flash-style)
    # softmax so only (2*H2, NT) kv and (S, NT) logits are live (v7x 64 MiB VMEM), and
    # optionally cast the N-length matmul operands to bf16 on v6e/v7x.
    grid = (batch // BB,)
    return pl.pallas_call(
        _fused_mlp_attn_kernel,
        grid=grid,
        in_specs=[
            pl.BlockSpec((BB * C0, N), lambda g: (g, 0)),
            pl.BlockSpec((BB * C0, S), lambda g: (g, 0)),
            pl.BlockSpec((H1, 1), lambda g: (0, 0)),
            pl.BlockSpec((H1, 1), lambda g: (0, 0)),
            pl.BlockSpec((H1, C0), lambda g: (0, 0)),
            pl.BlockSpec((H2, H1), lambda g: (0, 0)),
            pl.BlockSpec((H2, 1), lambda g: (0, 0)),
            pl.BlockSpec((H2, H2), lambda g: (0, 0)),
            pl.BlockSpec((2 * H2, H2), lambda g: (0, 0)),
            pl.BlockSpec((H2, H2), lambda g: (0, 0)),
        ],
        out_specs=pl.BlockSpec((BB, H2, S), lambda g: (g, 0, 0)),
        out_shape=jax.ShapeDtypeStruct((batch, H2, S), jnp.float32),
        compiler_params=pltpu.CompilerParams(
            dimension_semantics=("parallel",),
            vmem_limit_bytes=VMEM_LIMIT_BYTES),
    )(xyz2d, xc2d, scale, shift, w1, w2, b2, wq, wkv, wo)


# ----------------------------------------------------------------------------
# Full DownsampleBlock forward (point_features=None case)
# ----------------------------------------------------------------------------
def downsample_block_forward(xyz, params, init_idx):
    B, C0, N = xyz.shape
    S = N_CENTROIDS
    xyz2d = xyz.reshape(B * C0, N)          # free, contiguous view of the NCL tensor

    # 1) farthest point sampling + BN sufficient statistics in ONE pass over xyz (Pallas)
    idx, gram_blk, rowsum_blk = fps(xyz2d, init_idx, B, S)

    # 2) fold BatchNorm into an affine scale/shift from the 3x3 Gram / 3-vector sum (tiny XLA).
    BT = _batch_group(B)
    Gn = B // BT
    eye = jnp.eye(BT, dtype=jnp.float32)
    gram3 = jnp.einsum('gicjd,ij->cd',
                       gram_blk.reshape(Gn, BT, C0, BT, C0), eye)        # (3,3) sum_bn x x^T
    xsum = rowsum_blk.reshape(Gn, BT, C0).sum(axis=(0, 1))               # (3,)  sum_bn x
    cnt = jnp.float32(B * N)
    mean_x = xsum / cnt
    mean_h = params["w1"] @ mean_x                                       # conv1 mean (b1 cancels)
    ex2 = jnp.einsum('oc,cd,od->o', params["w1"], gram3, params["w1"]) / cnt
    # TODO(synk): E[h^2] - mean^2 in f32 can cancel catastrophically for extreme input statistics;
    # switch to a shifted/compensated accumulation if that regime matters.
    var = jnp.maximum(ex2 - mean_h * mean_h, 0.0)
    scale = params["gamma"][:, 0] * lax.rsqrt(var + BN_EPS)
    shift = params["beta"][:, 0] - mean_h * scale

    # 3) centroid gather on the 3-channel xyz (tiny XLA gather); new_xyz IS this gather.
    gidx = jnp.broadcast_to(idx[:, None, :], (B, C0, S))
    new_xyz = jnp.take_along_axis(xyz, gidx, axis=2)                     # (B, 3, S)

    # 4) fused MLP + Attention1d + residual (Pallas); centroid features are recomputed per-column
    #    from new_xyz, which equals gathering the MLP output exactly (k=1 convolutions).
    wkv = jnp.concatenate([params["wk"], params["wv"]], axis=0)          # fused K/V weights
    wq_scaled = params["wq"] * jnp.float32(1.0 / np.sqrt(HID2))          # fold 1/sqrt(C) into q
    out = fused_mlp_attention(xyz2d, new_xyz.reshape(B * C0, S),
                              scale.reshape(-1, 1), shift.reshape(-1, 1),
                              params["w1"], params["w2"], params["b2"],
                              wq_scaled, wkv, params["wo"], B)
    return new_xyz, out, idx


# ----------------------------------------------------------------------------
# Pure-JAX/NumPy reference (mirrors the PyTorch forward, including the b1 bias)
# ----------------------------------------------------------------------------
def ref_forward(xyz, params, init_idx):
    xyz_np = np.asarray(xyz, dtype=np.float32)
    B, C0, N = xyz_np.shape
    S = N_CENTROIDS
    idx = np.zeros((B, S), np.int32)
    for b in range(B):
        x = xyz_np[b]
        dist = np.full((N,), 1e10, np.float32)
        far = int(init_idx[b, 0])
        for i in range(S):
            idx[b, i] = far
            c = x[:, far:far + 1]
            d = np.sum((x - c) ** 2, axis=0)
            dist = np.minimum(dist, d)
            far = int(np.argmax(dist))
    idx = jnp.asarray(idx)

    g = params["gamma"][:, 0]
    be = params["beta"][:, 0]
    h = jnp.einsum('oc,bcn->bon', params["w1"], xyz) + params["b1"][:, 0][None, :, None]
    mean = jnp.mean(h, axis=(0, 2), keepdims=True)
    var = jnp.mean((h - mean) ** 2, axis=(0, 2), keepdims=True)
    hn = (h - mean) / jnp.sqrt(var + BN_EPS) * g[None, :, None] + be[None, :, None]
    a = jnp.where(hn >= 0, hn, LEAKY_SLOPE * hn)
    features = jnp.einsum('oc,bcn->bon', params["w2"], a) + params["b2"][:, 0][None, :, None]

    cent = jnp.take_along_axis(features, jnp.broadcast_to(idx[:, None, :], (B, HID2, S)), axis=2)
    new_xyz = jnp.take_along_axis(xyz, jnp.broadcast_to(idx[:, None, :], (B, C0, S)), axis=2)

    q = jnp.einsum('oc,bcs->bos', params["wq"], cent)
    k = jnp.einsum('oc,bcn->bon', params["wk"], features)
    v = jnp.einsum('oc,bcn->bon', params["wv"], features)
    logits = jnp.einsum('bcs,bcn->bsn', q, k) / (HID2 ** 0.5)
    p = jax.nn.softmax(logits, axis=-1)
    attn = jnp.einsum('bsn,bcn->bcs', p, v)
    out = jnp.einsum('oc,bcs->bos', params["wo"], attn)
    return new_xyz, cent + out, idx


if __name__ == "__main__":
    B, N = 2, 16
    key = jax.random.PRNGKey(0)
    ks = jax.random.split(key, 12)

    # deterministic synthetic parameters (shapes from the module __init__)
    params = {
        "w1":    jax.random.normal(ks[0], (HID1, IN_CHANNELS), jnp.float32) * 0.3,
        "b1":    jax.random.normal(ks[1], (HID1, 1), jnp.float32) * 0.1,   # cancelled by BN
        "gamma": 1.0 + 0.1 * jax.random.normal(ks[2], (HID1, 1), jnp.float32),
        "beta":  0.1 * jax.random.normal(ks[3], (HID1, 1), jnp.float32),
        "w2":    jax.random.normal(ks[4], (HID2, HID1), jnp.float32) * 0.2,
        "b2":    jax.random.normal(ks[5], (HID2, 1), jnp.float32) * 0.1,
        "wq":    jax.random.normal(ks[6], (HID2, HID2), jnp.float32) * 0.2,
        "wk":    jax.random.normal(ks[7], (HID2, HID2), jnp.float32) * 0.2,
        "wv":    jax.random.normal(ks[8], (HID2, HID2), jnp.float32) * 0.2,
        "wo":    jax.random.normal(ks[9], (HID2, HID2), jnp.float32) * 0.2,
    }

    xyz = jax.random.normal(ks[10], (B, IN_CHANNELS, N), jnp.float32)       # NCL like torch
    # TODO(synk): torch.randint initial farthest point -> deterministic host-provided seeds.
    init_idx = jax.random.randint(ks[11], (B, 1), 0, N, dtype=jnp.int32)

    new_xyz, out, idx = downsample_block_forward(xyz, params, init_idx)
    jax.block_until_ready((new_xyz, out, idx))

    ref_new_xyz, ref_out, ref_idx = ref_forward(xyz, params, init_idx)
    np.testing.assert_array_equal(np.asarray(idx), np.asarray(ref_idx))
    np.testing.assert_allclose(np.asarray(new_xyz), np.asarray(ref_new_xyz), rtol=1e-3, atol=1e-3)
    np.testing.assert_allclose(np.asarray(out), np.asarray(ref_out), rtol=2e-2, atol=2e-2)

    print("KERNEL_OK")
</pallas_src>

<mosaic_0001>
module attributes {stable_mosaic.version = 11 : i64} {
  func.func @_fps_kernel(%arg0: i32, %arg1: memref<6x16xf32, #tpu.memory_space<vmem>>, %arg2: memref<2x1xi32, #tpu.memory_space<vmem>>, %arg3: memref<2x8xi32, #tpu.memory_space<vmem>>, %arg4: memref<1x6x6xf32, #tpu.memory_space<vmem>>, %arg5: memref<1x6x1xf32, #tpu.memory_space<vmem>>) attributes {dimension_semantics = [#tpu.dimension_semantics<parallel>], iteration_bounds = array<i64: 1>, scalar_prefetch = 0 : i64, scratch_operands = 0 : i64, tpu.core_type = #tpu.core_type<tc>, window_params = [{transform_indices = @transform_0, window_bounds = array<i64: 6, 16>}, {transform_indices = @transform_1, window_bounds = array<i64: 2, 1>}, {transform_indices = @transform_2, window_bounds = array<i64: 2, 8>}, {transform_indices = @transform_3, window_bounds = array<i64: 1, 6, 6>}, {transform_indices = @transform_4, window_bounds = array<i64: 1, 6, 1>}]} {
    %c0 = arith.constant 0 : index
    %c0_0 = arith.constant 0 : index
    %0 = vector.load %arg1[%c0, %c0_0] : memref<6x16xf32, #tpu.memory_space<vmem>>, vector<6x16xf32>
    %cst = arith.constant dense<0.000000e+00> : vector<6x6xf32>
    %1 = tpu.matmul %0, %0, %cst {dimension_numbers = #tpu.dot_dimension_numbers<[1], [1], [0], [0], [0, 0, 1, 0], [], []>} : vector<6x16xf32>, vector<6x16xf32>, vector<6x6xf32> -> vector<6x6xf32>
    %c0_1 = arith.constant 0 : index
    %c0_2 = arith.constant 0 : index
    %c0_3 = arith.constant 0 : index
    %2 = vector.load %arg4[%c0_1, %c0_2, %c0_3] : memref<1x6x6xf32, #tpu.memory_space<vmem>>, vector<1x6x6xf32>
    %3 = vector.shape_cast %2 : vector<1x6x6xf32> to vector<6x6xf32>
    %4 = vector.shape_cast %1 : vector<6x6xf32> to vector<1x6x6xf32>
    tpu.vector_store %arg4[%c0_1, %c0_2, %c0_3], %4 {strides = array<i32>} : memref<1x6x6xf32, #tpu.memory_space<vmem>>, vector<1x6x6xf32>,
    %cst_4 = arith.constant dense<0.000000e+00> : vector<6xf32>
    %5 = vector.multi_reduction <add>, %0, %cst_4 [1] : vector<6x16xf32> to vector<6xf32>
    %6 = vector.shape_cast %5 : vector<6xf32> to vector<6x1xf32>
    %c0_5 = arith.constant 0 : index
    %c0_6 = arith.constant 0 : index
    %c0_7 = arith.constant 0 : index
    %7 = vector.load %arg5[%c0_5, %c0_6, %c0_7] : memref<1x6x1xf32, #tpu.memory_space<vmem>>, vector<1x6x1xf32>
    %8 = vector.shape_cast %7 : vector<1x6x1xf32> to vector<6x1xf32>
    %9 = vector.shape_cast %6 : vector<6x1xf32> to vector<1x6x1xf32>
    tpu.vector_store %arg5[%c0_5, %c0_6, %c0_7], %9 {strides = array<i32>} : memref<1x6x1xf32, #tpu.memory_space<vmem>>, vector<1x6x1xf32>,
    %10 = tpu.iota {dimensions = array<i32: 0>} : vector<2x6xi32>
    %11 = tpu.iota {dimensions = array<i32: 1>} : vector<2x6xi32>
    %c3_i32 = arith.constant 3 : i32
    %12 = vector.broadcast %c3_i32 : i32 to vector<2x6xi32>
    %13 = arith.muli %12, %10 : vector<2x6xi32>
    %14 = arith.cmpi sge, %11, %13 : vector<2x6xi32>
    %c3_i32_8 = arith.constant 3 : i32
    %15 = vector.broadcast %c3_i32_8 : i32 to vector<2x6xi32>
    %16 = arith.muli %15, %10 : vector<2x6xi32>
    %c3_i32_9 = arith.constant 3 : i32
    %17 = vector.broadcast %c3_i32_9 : i32 to vector<2x6xi32>
    %18 = arith.addi %16, %17 : vector<2x6xi32>
    %19 = arith.cmpi slt, %11, %18 : vector<2x6xi32>
    %20 = arith.andi %14, %19 : vector<2x6xi1>
    %21 = arith.extui %20 : vector<2x6xi1> to vector<2x6xi32>
    %22 = arith.sitofp %21 : vector<2x6xi32> to vector<2x6xf32>
    %23 = tpu.iota {dimensions = array<i32: 0>} : vector<6x2xi32>
    %24 = tpu.iota {dimensions = array<i32: 1>} : vector<6x2xi32>
    %c3_i32_10 = arith.constant 3 : i32
    %25 = vector.broadcast %c3_i32_10 : i32 to vector<6x2xi32>
    %26 = arith.muli %25, %24 : vector<6x2xi32>
    %27 = arith.cmpi sge, %23, %26 : vector<6x2xi32>
    %c3_i32_11 = arith.constant 3 : i32
    %28 = vector.broadcast %c3_i32_11 : i32 to vector<6x2xi32>
    %29 = arith.muli %28, %24 : vector<6x2xi32>
    %c3_i32_12 = arith.constant 3 : i32
    %30 = vector.broadcast %c3_i32_12 : i32 to vector<6x2xi32>
    %31 = arith.addi %29, %30 : vector<6x2xi32>
    %32 = arith.cmpi slt, %23, %31 : vector<6x2xi32>
    %33 = arith.andi %27, %32 : vector<6x2xi1>
    %34 = arith.extui %33 : vector<6x2xi1> to vector<6x2xi32>
    %35 = arith.sitofp %34 : vector<6x2xi32> to vector<6x2xf32>
    %36 = tpu.iota {dimensions = array<i32: 1>} : vector<2x16xi32>
    %37 = tpu.iota {dimensions = array<i32: 1>} : vector<2x8xi32>
    %38 = arith.mulf %0, %0 : vector<6x16xf32>
    %cst_13 = arith.constant dense<0.000000e+00> : vector<2x16xf32>
    %39 = tpu.matmul %22, %38, %cst_13 {dimension_numbers = #tpu.dot_dimension_numbers<[1], [0], [0], [1], [0, 0, 1, 1], [], []>} : vector<2x6xf32>, vector<6x16xf32>, vector<2x16xf32> -> vector<2x16xf32>
    %c0_14 = arith.constant 0 : index
    %c0_15 = arith.constant 0 : index
    %40 = vector.load %arg2[%c0_14, %c0_15] : memref<2x1xi32, #tpu.memory_space<vmem>>, vector<2x1xi32>
    %cst_16 = arith.constant 1.000000e+10 : f32
    %41 = vector.broadcast %cst_16 : f32 to vector<2x16xf32>
    %c0_i32 = arith.constant 0 : i32
    %42 = vector.broadcast %c0_i32 : i32 to vector<2x8xi32>
    %c0_i32_17 = arith.constant 0 : i32
    %43 = vector.broadcast %c0_i32_17 : i32 to vector<2x8xi32>
    %44 = arith.cmpi eq, %37, %43 : vector<2x8xi32>
    %45 = vector.shape_cast %40 : vector<2x1xi32> to vector<2x1xi32>
    %46 = vector.broadcast %45 : vector<2x1xi32> to vector<2x8xi32>
    %47 = arith.select %44, %46, %42 : vector<2x8xi1>, vector<2x8xi32>
    %48 = vector.broadcast %40 : vector<2x1xi32> to vector<2x16xi32>
    %49 = arith.cmpi eq, %36, %48 : vector<2x16xi32>
    %50 = arith.extui %49 : vector<2x16xi1> to vector<2x16xi32>
    %51 = arith.sitofp %50 : vector<2x16xi32> to vector<2x16xf32>
    %cst_18 = arith.constant dense<0.000000e+00> : vector<6x16xf32>
    %52 = tpu.matmul %35, %51, %cst_18 {dimension_numbers = #tpu.dot_dimension_numbers<[1], [0], [0], [1], [0, 0, 1, 1], [], []>} : vector<6x2xf32>, vector<2x16xf32>, vector<6x16xf32> -> vector<6x16xf32>
    %53 = arith.mulf %0, %52 : vector<6x16xf32>
    %cst_19 = arith.constant dense<0.000000e+00> : vector<6xf32>
    %54 = vector.multi_reduction <add>, %53, %cst_19 [1] : vector<6x16xf32> to vector<6xf32>
    %55 = vector.shape_cast %54 : vector<6xf32> to vector<6x1xf32>
    %56 = vector.broadcast %55 : vector<6x1xf32> to vector<6x16xf32>
    %57 = arith.mulf %0, %56 : vector<6x16xf32>
    %cst_20 = arith.constant dense<0.000000e+00> : vector<2x16xf32>
    %58 = tpu.matmul %22, %57, %cst_20 {dimension_numbers = #tpu.dot_dimension_numbers<[1], [0], [0], [1], [0, 0, 1, 1], [], []>} : vector<2x6xf32>, vector<6x16xf32>, vector<2x16xf32> -> vector<2x16xf32>
    %59 = arith.mulf %55, %55 : vector<6x1xf32>
    %cst_21 = arith.constant dense<0.000000e+00> : vector<2x1xf32>
    %60 = tpu.matmul %22, %59, %cst_21 {dimension_numbers = #tpu.dot_dimension_numbers<[1], [0], [0], [1], [0, 0, 1, 1], [], []>} : vector<2x6xf32>, vector<6x1xf32>, vector<2x1xf32> -> vector<2x1xf32>
    %cst_22 = arith.constant 2.000000e+00 : f32
    %61 = vector.broadcast %cst_22 : f32 to vector<2x16xf32>
    %62 = arith.mulf %61, %58 : vector<2x16xf32>
    %63 = arith.subf %39, %62 : vector<2x16xf32>
    %64 = vector.broadcast %60 : vector<2x1xf32> to vector<2x16xf32>
    %65 = arith.addf %63, %64 : vector<2x16xf32>
    %66 = arith.minimumf %41, %65 : vector<2x16xf32>
    %cst_23 = arith.constant dense<0xFF800000> : vector<2xf32>
    %67 = vector.multi_reduction <maximumf>, %66, %cst_23 [1] : vector<2x16xf32> to vector<2xf32>
    %68 = vector.shape_cast %67 : vector<2xf32> to vector<2x1xf32>
    %69 = vector.broadcast %68 : vector<2x1xf32> to vector<2x16xf32>
    %70 = arith.cmpf oeq, %66, %69 : vector<2x16xf32>
    %c16_i32 = arith.constant 16 : i32
    %71 = vector.broadcast %c16_i32 : i32 to vector<2x16xi32>
    %72 = arith.select %70, %36, %71 : vector<2x16xi1>, vector<2x16xi32>
    %cst_24 = arith.constant dense<2147483647> : vector<2xi32>
    %73 = vector.multi_reduction <minsi>, %72, %cst_24 [1] : vector<2x16xi32> to vector<2xi32>
    %74 = vector.shape_cast %73 : vector<2xi32> to vector<2x1xi32>
    %c1_i32 = arith.constant 1 : i32
    %75 = vector.broadcast %c1_i32 : i32 to vector<2x8xi32>
    %76 = arith.cmpi eq, %37, %75 : vector<2x8xi32>
    %77 = vector.shape_cast %74 : vector<2x1xi32> to vector<2x1xi32>
    %78 = vector.broadcast %77 : vector<2x1xi32> to vector<2x8xi32>
    %79 = arith.select %76, %78, %47 : vector<2x8xi1>, vector<2x8xi32>
    %80 = vector.broadcast %74 : vector<2x1xi32> to vector<2x16xi32>
    %81 = arith.cmpi eq, %36, %80 : vector<2x16xi32>
    %82 = arith.extui %81 : vector<2x16xi1> to vector<2x16xi32>
    %83 = arith.sitofp %82 : vector<2x16xi32> to vector<2x16xf32>
    %cst_25 = arith.constant dense<0.000000e+00> : vector<6x16xf32>
    %84 = tpu.matmul %35, %83, %cst_25 {dimension_numbers = #tpu.dot_dimension_numbers<[1], [0], [0], [1], [0, 0, 1, 1], [], []>} : vector<6x2xf32>, vector<2x16xf32>, vector<6x16xf32> -> vector<6x16xf32>
    %85 = arith.mulf %0, %84 : vector<6x16xf32>
    %cst_26 = arith.constant dense<0.000000e+00> : vector<6xf32>
    %86 = vector.multi_reduction <add>, %85, %cst_26 [1] : vector<6x16xf32> to vector<6xf32>
    %87 = vector.shape_cast %86 : vector<6xf32> to vector<6x1xf32>
    %88 = vector.broadcast %87 : vector<6x1xf32> to vector<6x16xf32>
    %89 = arith.mulf %0, %88 : vector<6x16xf32>
    %cst_27 = arith.constant dense<0.000000e+00> : vector<2x16xf32>
    %90 = tpu.matmul %22, %89, %cst_27 {dimension_numbers = #tpu.dot_dimension_numbers<[1], [0], [0], [1], [0, 0, 1, 1], [], []>} : vector<2x6xf32>, vector<6x16xf32>, vector<2x16xf32> -> vector<2x16xf32>
    %91 = arith.mulf %87, %87 : vector<6x1xf32>
    %cst_28 = arith.constant dense<0.000000e+00> : vector<2x1xf32>
    %92 = tpu.matmul %22, %91, %cst_28 {dimension_numbers = #tpu.dot_dimension_numbers<[1], [0], [0], [1], [0, 0, 1, 1], [], []>} : vector<2x6xf32>, vector<6x1xf32>, vector<2x1xf32> -> vector<2x1xf32>
    %cst_29 = arith.constant 2.000000e+00 : f32
    %93 = vector.broadcast %cst_29 : f32 to vector<2x16xf32>
    %94 = arith.mulf %93, %90 : vector<2x16xf32>
    %95 = arith.subf %39, %94 : vector<2x16xf32>
    %96 = vector.broadcast %92 : vector<2x1xf32> to vector<2x16xf32>
    %97 = arith.addf %95, %96 : vector<2x16xf32>
    %98 = arith.minimumf %66, %97 : vector<2x16xf32>
    %cst_30 = arith.constant dense<0xFF800000> : vector<2xf32>
    %99 = vector.multi_reduction <maximumf>, %98, %cst_30 [1] : vector<2x16xf32> to vector<2xf32>
    %100 = vector.shape_cast %99 : vector<2xf32> to vector<2x1xf32>
    %101 = vector.broadcast %100 : vector<2x1xf32> to vector<2x16xf32>
    %102 = arith.cmpf oeq, %98, %101 : vector<2x16xf32>
    %c16_i32_31 = arith.constant 16 : i32
    %103 = vector.broadcast %c16_i32_31 : i32 to vector<2x16xi32>
    %104 = arith.select %102, %36, %103 : vector<2x16xi1>, vector<2x16xi32>
    %cst_32 = arith.constant dense<2147483647> : vector<2xi32>
    %105 = vector.multi_reduction <minsi>, %104, %cst_32 [1] : vector<2x16xi32> to vector<2xi32>
    %106 = vector.shape_cast %105 : vector<2xi32> to vector<2x1xi32>
    %c2_i32 = arith.constant 2 : i32
    %107 = vector.broadcast %c2_i32 : i32 to vector<2x8xi32>
    %108 = arith.cmpi eq, %37, %107 : vector<2x8xi32>
    %109 = vector.shape_cast %106 : vector<2x1xi32> to vector<2x1xi32>
    %110 = vector.broadcast %109 : vector<2x1xi32> to vector<2x8xi32>
    %111 = arith.select %108, %110, %79 : vector<2x8xi1>, vector<2x8xi32>
    %112 = vector.broadcast %106 : vector<2x1xi32> to vector<2x16xi32>
    %113 = arith.cmpi eq, %36, %112 : vector<2x16xi32>
    %114 = arith.extui %113 : vector<2x16xi1> to vector<2x16xi32>
    %115 = arith.sitofp %114 : vector<2x16xi32> to vector<2x16xf32>
    %cst_33 = arith.constant dense<0.000000e+00> : vector<6x16xf32>
    %116 = tpu.matmul %35, %115, %cst_33 {dimension_numbers = #tpu.dot_dimension_numbers<[1], [0], [0], [1], [0, 0, 1, 1], [], []>} : vector<6x2xf32>, vector<2x16xf32>, vector<6x16xf32> -> vector<6x16xf32>
    %117 = arith.mulf %0, %116 : vector<6x16xf32>
    %cst_34 = arith.constant dense<0.000000e+00> : vector<6xf32>
    %118 = vector.multi_reduction <add>, %117, %cst_34 [1] : vector<6x16xf32> to vector<6xf32>
    %119 = vector.shape_cast %118 : vector<6xf32> to vector<6x1xf32>
    %120 = vector.broadcast %119 : vector<6x1xf32> to vector<6x16xf32>
    %121 = arith.mulf %0, %120 : vector<6x16xf32>
    %cst_35 = arith.constant dense<0.000000e+00> : vector<2x16xf32>
    %122 = tpu.matmul %22, %121, %cst_35 {dimension_numbers = #tpu.dot_dimension_numbers<[1], [0], [0], [1], [0, 0, 1, 1], [], []>} : vector<2x6xf32>, vector<6x16xf32>, vector<2x16xf32> -> vector<2x16xf32>
    %123 = arith.mulf %119, %119 : vector<6x1xf32>
    %cst_36 = arith.constant dense<0.000000e+00> : vector<2x1xf32>
    %124 = tpu.matmul %22, %123, %cst_36 {dimension_numbers = #tpu.dot_dimension_numbers<[1], [0], [0], [1], [0, 0, 1, 1], [], []>} : vector<2x6xf32>, vector<6x1xf32>, vector<2x1xf32> -> vector<2x1xf32>
    %cst_37 = arith.constant 2.000000e+00 : f32
    %125 = vector.broadcast %cst_37 : f32 to vector<2x16xf32>
    %126 = arith.mulf %125, %122 : vector<2x16xf32>
    %127 = arith.subf %39, %126 : vector<2x16xf32>
    %128 = vector.broadcast %124 : vector<2x1xf32> to vector<2x16xf32>
    %129 = arith.addf %127, %128 : vector<2x16xf32>
    %130 = arith.minimumf %98, %129 : vector<2x16xf32>
    %cst_38 = arith.constant dense<0xFF800000> : vector<2xf32>
    %131 = vector.multi_reduction <maximumf>, %130, %cst_38 [1] : vector<2x16xf32> to vector<2xf32>
    %132 = vector.shape_cast %131 : vector<2xf32> to vector<2x1xf32>
    %133 = vector.broadcast %132 : vector<2x1xf32> to vector<2x16xf32>
    %134 = arith.cmpf oeq, %130, %133 : vector<2x16xf32>
    %c16_i32_39 = arith.constant 16 : i32
    %135 = vector.broadcast %c16_i32_39 : i32 to vector<2x16xi32>
    %136 = arith.select %134, %36, %135 : vector<2x16xi1>, vector<2x16xi32>
    %cst_40 = arith.constant dense<2147483647> : vector<2xi32>
    %137 = vector.multi_reduction <minsi>, %136, %cst_40 [1] : vector<2x16xi32> to vector<2xi32>
    %138 = vector.shape_cast %137 : vector<2xi32> to vector<2x1xi32>
    %c3_i32_41 = arith.constant 3 : i32
    %139 = vector.broadcast %c3_i32_41 : i32 to vector<2x8xi32>
    %140 = arith.cmpi eq, %37, %139 : vector<2x8xi32>
    %141 = vector.shape_cast %138 : vector<2x1xi32> to vector<2x1xi32>
    %142 = vector.broadcast %141 : vector<2x1xi32> to vector<2x8xi32>
    %143 = arith.select %140, %142, %111 : vector<2x8xi1>, vector<2x8xi32>
    %144 = vector.broadcast %138 : vector<2x1xi32> to vector<2x16xi32>
    %145 = arith.cmpi eq, %36, %144 : vector<2x16xi32>
    %146 = arith.extui %145 : vector<2x16xi1> to vector<2x16xi32>
    %147 = arith.sitofp %146 : vector<2x16xi32> to vector<2x16xf32>
    %cst_42 = arith.constant dense<0.000000e+00> : vector<6x16xf32>
    %148 = tpu.matmul %35, %147, %cst_42 {dimension_numbers = #tpu.dot_dimension_numbers<[1], [0], [0], [1], [0, 0, 1, 1], [], []>} : vector<6x2xf32>, vector<2x16xf32>, vector<6x16xf32> -> vector<6x16xf32>
    %149 = arith.mulf %0, %148 : vector<6x16xf32>
    %cst_43 = arith.constant dense<0.000000e+00> : vector<6xf32>
    %150 = vector.multi_reduction <add>, %149, %cst_43 [1] : vector<6x16xf32> to vector<6xf32>
    %151 = vector.shape_cast %150 : vector<6xf32> to vector<6x1xf32>
    %152 = vector.broadcast %151 : vector<6x1xf32> to vector<6x16xf32>
    %153 = arith.mulf %0, %152 : vector<6x16xf32>
    %cst_44 = arith.constant dense<0.000000e+00> : vector<2x16xf32>
    %154 = tpu.matmul %22, %153, %cst_44 {dimension_numbers = #tpu.dot_dimension_numbers<[1], [0], [0], [1], [0, 0, 1, 1], [], []>} : vector<2x6xf32>, vector<6x16xf32>, vector<2x16xf32> -> vector<2x16xf32>
    %155 = arith.mulf %151, %151 : vector<6x1xf32>
    %cst_45 = arith.constant dense<0.000000e+00> : vector<2x1xf32>
    %156 = tpu.matmul %22, %155, %cst_45 {dimension_numbers = #tpu.dot_dimension_numbers<[1], [0], [0], [1], [0, 0, 1, 1], [], []>} : vector<2x6xf32>, vector<6x1xf32>, vector<2x1xf32> -> vector<2x1xf32>
    %cst_46 = arith.constant 2.000000e+00 : f32
    %157 = vector.broadcast %cst_46 : f32 to vector<2x16xf32>
    %158 = arith.mulf %157, %154 : vector<2x16xf32>
    %159 = arith.subf %39, %158 : vector<2x16xf32>
    %160 = vector.broadcast %156 : vector<2x1xf32> to vector<2x16xf32>
    %161 = arith.addf %159, %160 : vector<2x16xf32>
    %162 = arith.minimumf %130, %161 : vector<2x16xf32>
    %cst_47 = arith.constant dense<0xFF800000> : vector<2xf32>
    %163 = vector.multi_reduction <maximumf>, %162, %cst_47 [1] : vector<2x16xf32> to vector<2xf32>
    %164 = vector.shape_cast %163 : vector<2xf32> to vector<2x1xf32>
    %165 = vector.broadcast %164 : vector<2x1xf32> to vector<2x16xf32>
    %166 = arith.cmpf oeq, %162, %165 : vector<2x16xf32>
    %c16_i32_48 = arith.constant 16 : i32
    %167 = vector.broadcast %c16_i32_48 : i32 to vector<2x16xi32>
    %168 = arith.select %166, %36, %167 : vector<2x16xi1>, vector<2x16xi32>
    %cst_49 = arith.constant dense<2147483647> : vector<2xi32>
    %169 = vector.multi_reduction <minsi>, %168, %cst_49 [1] : vector<2x16xi32> to vector<2xi32>
    %170 = vector.shape_cast %169 : vector<2xi32> to vector<2x1xi32>
    %c4_i32 = arith.constant 4 : i32
    %171 = vector.broadcast %c4_i32 : i32 to vector<2x8xi32>
    %172 = arith.cmpi eq, %37, %171 : vector<2x8xi32>
    %173 = vector.shape_cast %170 : vector<2x1xi32> to vector<2x1xi32>
    %174 = vector.broadcast %173 : vector<2x1xi32> to vector<2x8xi32>
    %175 = arith.select %172, %174, %143 : vector<2x8xi1>, vector<2x8xi32>
    %176 = vector.broadcast %170 : vector<2x1xi32> to vector<2x16xi32>
    %177 = arith.cmpi eq, %36, %176 : vector<2x16xi32>
    %178 = arith.extui %177 : vector<2x16xi1> to vector<2x16xi32>
    %179 = arith.sitofp %178 : vector<2x16xi32> to vector<2x16xf32>
    %cst_50 = arith.constant dense<0.000000e+00> : vector<6x16xf32>
    %180 = tpu.matmul %35, %179, %cst_50 {dimension_numbers = #tpu.dot_dimension_numbers<[1], [0], [0], [1], [0, 0, 1, 1], [], []>} : vector<6x2xf32>, vector<2x16xf32>, vector<6x16xf32> -> vector<6x16xf32>
    %181 = arith.mulf %0, %180 : vector<6x16xf32>
    %cst_51 = arith.constant dense<0.000000e+00> : vector<6xf32>
    %182 = vector.multi_reduction <add>, %181, %cst_51 [1] : vector<6x16xf32> to vector<6xf32>
    %183 = vector.shape_cast %182 : vector<6xf32> to vector<6x1xf32>
    %184 = vector.broadcast %183 : vector<6x1xf32> to vector<6x16xf32>
    %185 = arith.mulf %0, %184 : vector<6x16xf32>
    %cst_52 = arith.constant dense<0.000000e+00> : vector<2x16xf32>
    %186 = tpu.matmul %22, %185, %cst_52 {dimension_numbers = #tpu.dot_dimension_numbers<[1], [0], [0], [1], [0, 0, 1, 1], [], []>} : vector<2x6xf32>, vector<6x16xf32>, vector<2x16xf32> -> vector<2x16xf32>
    %187 = arith.mulf %183, %183 : vector<6x1xf32>
    %cst_53 = arith.constant dense<0.000000e+00> : vector<2x1xf32>
    %188 = tpu.matmul %22, %187, %cst_53 {dimension_numbers = #tpu.dot_dimension_numbers<[1], [0], [0], [1], [0, 0, 1, 1], [], []>} : vector<2x6xf32>, vector<6x1xf32>, vector<2x1xf32> -> vector<2x1xf32>
    %cst_54 = arith.constant 2.000000e+00 : f32
    %189 = vector.broadcast %cst_54 : f32 to vector<2x16xf32>
    %190 = arith.mulf %189, %186 : vector<2x16xf32>
    %191 = arith.subf %39, %190 : vector<2x16xf32>
    %192 = vector.broadcast %188 : vector<2x1xf32> to vector<2x16xf32>
    %193 = arith.addf %191, %192 : vector<2x16xf32>
    %194 = arith.minimumf %162, %193 : vector<2x16xf32>
    %cst_55 = arith.constant dense<0xFF800000> : vector<2xf32>
    %195 = vector.multi_reduction <maximumf>, %194, %cst_55 [1] : vector<2x16xf32> to vector<2xf32>
    %196 = vector.shape_cast %195 : vector<2xf32> to vector<2x1xf32>
    %197 = vector.broadcast %196 : vector<2x1xf32> to vector<2x16xf32>
    %198 = arith.cmpf oeq, %194, %197 : vector<2x16xf32>
    %c16_i32_56 = arith.constant 16 : i32
    %199 = vector.broadcast %c16_i32_56 : i32 to vector<2x16xi32>
    %200 = arith.select %198, %36, %199 : vector<2x16xi1>, vector<2x16xi32>
    %cst_57 = arith.constant dense<2147483647> : vector<2xi32>
    %201 = vector.multi_reduction <minsi>, %200, %cst_57 [1] : vector<2x16xi32> to vector<2xi32>
    %202 = vector.shape_cast %201 : vector<2xi32> to vector<2x1xi32>
    %c5_i32 = arith.constant 5 : i32
    %203 = vector.broadcast %c5_i32 : i32 to vector<2x8xi32>
    %204 = arith.cmpi eq, %37, %203 : vector<2x8xi32>
    %205 = vector.shape_cast %202 : vector<2x1xi32> to vector<2x1xi32>
    %206 = vector.broadcast %205 : vector<2x1xi32> to vector<2x8xi32>
    %207 = arith.select %204, %206, %175 : vector<2x8xi1>, vector<2x8xi32>
    %208 = vector.broadcast %202 : vector<2x1xi32> to vector<2x16xi32>
    %209 = arith.cmpi eq, %36, %208 : vector<2x16xi32>
    %210 = arith.extui %209 : vector<2x16xi1> to vector<2x16xi32>
    %211 = arith.sitofp %210 : vector<2x16xi32> to vector<2x16xf32>
    %cst_58 = arith.constant dense<0.000000e+00> : vector<6x16xf32>
    %212 = tpu.matmul %35, %211, %cst_58 {dimension_numbers = #tpu.dot_dimension_numbers<[1], [0], [0], [1], [0, 0, 1, 1], [], []>} : vector<6x2xf32>, vector<2x16xf32>, vector<6x16xf32> -> vector<6x16xf32>
    %213 = arith.mulf %0, %212 : vector<6x16xf32>
    %cst_59 = arith.constant dense<0.000000e+00> : vector<6xf32>
    %214 = vector.multi_reduction <add>, %213, %cst_59 [1] : vector<6x16xf32> to vector<6xf32>
    %215 = vector.shape_cast %214 : vector<6xf32> to vector<6x1xf32>
    %216 = vector.broadcast %215 : vector<6x1xf32> to vector<6x16xf32>
    %217 = arith.mulf %0, %216 : vector<6x16xf32>
    %cst_60 = arith.constant dense<0.000000e+00> : vector<2x16xf32>
    %218 = tpu.matmul %22, %217, %cst_60 {dimension_numbers = #tpu.dot_dimension_numbers<[1], [0], [0], [1], [0, 0, 1, 1], [], []>} : vector<2x6xf32>, vector<6x16xf32>, vector<2x16xf32> -> vector<2x16xf32>
    %219 = arith.mulf %215, %215 : vector<6x1xf32>
    %cst_61 = arith.constant dense<0.000000e+00> : vector<2x1xf32>
    %220 = tpu.matmul %22, %219, %cst_61 {dimension_numbers = #tpu.dot_dimension_numbers<[1], [0], [0], [1], [0, 0, 1, 1], [], []>} : vector<2x6xf32>, vector<6x1xf32>, vector<2x1xf32> -> vector<2x1xf32>
    %cst_62 = arith.constant 2.000000e+00 : f32
    %221 = vector.broadcast %cst_62 : f32 to vector<2x16xf32>
    %222 = arith.mulf %221, %218 : vector<2x16xf32>
    %223 = arith.subf %39, %222 : vector<2x16xf32>
    %224 = vector.broadcast %220 : vector<2x1xf32> to vector<2x16xf32>
    %225 = arith.addf %223, %224 : vector<2x16xf32>
    %226 = arith.minimumf %194, %225 : vector<2x16xf32>
    %cst_63 = arith.constant dense<0xFF800000> : vector<2xf32>
    %227 = vector.multi_reduction <maximumf>, %226, %cst_63 [1] : vector<2x16xf32> to vector<2xf32>
    %228 = vector.shape_cast %227 : vector<2xf32> to vector<2x1xf32>
    %229 = vector.broadcast %228 : vector<2x1xf32> to vector<2x16xf32>
    %230 = arith.cmpf oeq, %226, %229 : vector<2x16xf32>
    %c16_i32_64 = arith.constant 16 : i32
    %231 = vector.broadcast %c16_i32_64 : i32 to vector<2x16xi32>
    %232 = arith.select %230, %36, %231 : vector<2x16xi1>, vector<2x16xi32>
    %cst_65 = arith.constant dense<2147483647> : vector<2xi32>
    %233 = vector.multi_reduction <minsi>, %232, %cst_65 [1] : vector<2x16xi32> to vector<2xi32>
    %234 = vector.shape_cast %233 : vector<2xi32> to vector<2x1xi32>
    %c6_i32 = arith.constant 6 : i32
    %235 = vector.broadcast %c6_i32 : i32 to vector<2x8xi32>
    %236 = arith.cmpi eq, %37, %235 : vector<2x8xi32>
    %237 = vector.shape_cast %234 : vector<2x1xi32> to vector<2x1xi32>
    %238 = vector.broadcast %237 : vector<2x1xi32> to vector<2x8xi32>
    %239 = arith.select %236, %238, %207 : vector<2x8xi1>, vector<2x8xi32>
    %240 = vector.broadcast %234 : vector<2x1xi32> to vector<2x16xi32>
    %241 = arith.cmpi eq, %36, %240 : vector<2x16xi32>
    %242 = arith.extui %241 : vector<2x16xi1> to vector<2x16xi32>
    %243 = arith.sitofp %242 : vector<2x16xi32> to vector<2x16xf32>
    %cst_66 = arith.constant dense<0.000000e+00> : vector<6x16xf32>
    %244 = tpu.matmul %35, %243, %cst_66 {dimension_numbers = #tpu.dot_dimension_numbers<[1], [0], [0], [1], [0, 0, 1, 1], [], []>} : vector<6x2xf32>, vector<2x16xf32>, vector<6x16xf32> -> vector<6x16xf32>
    %245 = arith.mulf %0, %244 : vector<6x16xf32>
    %cst_67 = arith.constant dense<0.000000e+00> : vector<6xf32>
    %246 = vector.multi_reduction <add>, %245, %cst_67 [1] : vector<6x16xf32> to vector<6xf32>
    %247 = vector.shape_cast %246 : vector<6xf32> to vector<6x1xf32>
    %248 = vector.broadcast %247 : vector<6x1xf32> to vector<6x16xf32>
    %249 = arith.mulf %0, %248 : vector<6x16xf32>
    %cst_68 = arith.constant dense<0.000000e+00> : vector<2x16xf32>
    %250 = tpu.matmul %22, %249, %cst_68 {dimension_numbers = #tpu.dot_dimension_numbers<[1], [0], [0], [1], [0, 0, 1, 1], [], []>} : vector<2x6xf32>, vector<6x16xf32>, vector<2x16xf32> -> vector<2x16xf32>
    %251 = arith.mulf %247, %247 : vector<6x1xf32>
    %cst_69 = arith.constant dense<0.000000e+00> : vector<2x1xf32>
    %252 = tpu.matmul %22, %251, %cst_69 {dimension_numbers = #tpu.dot_dimension_numbers<[1], [0], [0], [1], [0, 0, 1, 1], [], []>} : vector<2x6xf32>, vector<6x1xf32>, vector<2x1xf32> -> vector<2x1xf32>
    %cst_70 = arith.constant 2.000000e+00 : f32
    %253 = vector.broadcast %cst_70 : f32 to vector<2x16xf32>
    %254 = arith.mulf %253, %250 : vector<2x16xf32>
    %255 = arith.subf %39, %254 : vector<2x16xf32>
    %256 = vector.broadcast %252 : vector<2x1xf32> to vector<2x16xf32>
    %257 = arith.addf %255, %256 : vector<2x16xf32>
    %258 = arith.minimumf %226, %257 : vector<2x16xf32>
    %cst_71 = arith.constant dense<0xFF800000> : vector<2xf32>
    %259 = vector.multi_reduction <maximumf>, %258, %cst_71 [1] : vector<2x16xf32> to vector<2xf32>
    %260 = vector.shape_cast %259 : vector<2xf32> to vector<2x1xf32>
    %261 = vector.broadcast %260 : vector<2x1xf32> to vector<2x16xf32>
    %262 = arith.cmpf oeq, %258, %261 : vector<2x16xf32>
    %c16_i32_72 = arith.constant 16 : i32
    %263 = vector.broadcast %c16_i32_72 : i32 to vector<2x16xi32>
    %264 = arith.select %262, %36, %263 : vector<2x16xi1>, vector<2x16xi32>
    %cst_73 = arith.constant dense<2147483647> : vector<2xi32>
    %265 = vector.multi_reduction <minsi>, %264, %cst_73 [1] : vector<2x16xi32> to vector<2xi32>
    %266 = vector.shape_cast %265 : vector<2xi32> to vector<2x1xi32>
    %c7_i32 = arith.constant 7 : i32
    %267 = vector.broadcast %c7_i32 : i32 to vector<2x8xi32>
    %268 = arith.cmpi eq, %37, %267 : vector<2x8xi32>
    %269 = vector.shape_cast %266 : vector<2x1xi32> to vector<2x1xi32>
    %270 = vector.broadcast %269 : vector<2x1xi32> to vector<2x8xi32>
    %271 = arith.select %268, %270, %239 : vector<2x8xi1>, vector<2x8xi32>
    %272 = vector.broadcast %266 : vector<2x1xi32> to vector<2x16xi32>
    %273 = arith.cmpi eq, %36, %272 : vector<2x16xi32>
    %274 = arith.extui %273 : vector<2x16xi1> to vector<2x16xi32>
    %275 = arith.sitofp %274 : vector<2x16xi32> to vector<2x16xf32>
    %cst_74 = arith.constant dense<0.000000e+00> : vector<6x16xf32>
    %276 = tpu.matmul %35, %275, %cst_74 {dimension_numbers = #tpu.dot_dimension_numbers<[1], [0], [0], [1], [0, 0, 1, 1], [], []>} : vector<6x2xf32>, vector<2x16xf32>, vector<6x16xf32> -> vector<6x16xf32>
    %277 = arith.mulf %0, %276 : vector<6x16xf32>
    %cst_75 = arith.constant dense<0.000000e+00> : vector<6xf32>
    %278 = vector.multi_reduction <add>, %277, %cst_75 [1] : vector<6x16xf32> to vector<6xf32>
    %279 = vector.shape_cast %278 : vector<6xf32> to vector<6x1xf32>
    %280 = vector.broadcast %279 : vector<6x1xf32> to vector<6x16xf32>
    %281 = arith.mulf %0, %280 : vector<6x16xf32>
    %cst_76 = arith.constant dense<0.000000e+00> : vector<2x16xf32>
    %282 = tpu.matmul %22, %281, %cst_76 {dimension_numbers = #tpu.dot_dimension_numbers<[1], [0], [0], [1], [0, 0, 1, 1], [], []>} : vector<2x6xf32>, vector<6x16xf32>, vector<2x16xf32> -> vector<2x16xf32>
    %283 = arith.mulf %279, %279 : vector<6x1xf32>
    %cst_77 = arith.constant dense<0.000000e+00> : vector<2x1xf32>
    %284 = tpu.matmul %22, %283, %cst_77 {dimension_numbers = #tpu.dot_dimension_numbers<[1], [0], [0], [1], [0, 0, 1, 1], [], []>} : vector<2x6xf32>, vector<6x1xf32>, vector<2x1xf32> -> vector<2x1xf32>
    %cst_78 = arith.constant 2.000000e+00 : f32
    %285 = vector.broadcast %cst_78 : f32 to vector<2x16xf32>
    %286 = arith.mulf %285, %282 : vector<2x16xf32>
    %287 = arith.subf %39, %286 : vector<2x16xf32>
    %288 = vector.broadcast %284 : vector<2x1xf32> to vector<2x16xf32>
    %289 = arith.addf %287, %288 : vector<2x16xf32>
    %290 = arith.minimumf %258, %289 : vector<2x16xf32>
    %cst_79 = arith.constant dense<0xFF800000> : vector<2xf32>
    %291 = vector.multi_reduction <maximumf>, %290, %cst_79 [1] : vector<2x16xf32> to vector<2xf32>
    %292 = vector.shape_cast %291 : vector<2xf32> to vector<2x1xf32>
    %293 = vector.broadcast %292 : vector<2x1xf32> to vector<2x16xf32>
    %294 = arith.cmpf oeq, %290, %293 : vector<2x16xf32>
    %c16_i32_80 = arith.constant 16 : i32
    %295 = vector.broadcast %c16_i32_80 : i32 to vector<2x16xi32>
    %296 = arith.select %294, %36, %295 : vector<2x16xi1>, vector<2x16xi32>
    %cst_81 = arith.constant dense<2147483647> : vector<2xi32>
    %297 = vector.multi_reduction <minsi>, %296, %cst_81 [1] : vector<2x16xi32> to vector<2xi32>
    %298 = vector.shape_cast %297 : vector<2xi32> to vector<2x1xi32>
    %c8_i32 = arith.constant 8 : i32
    %c0_82 = arith.constant 0 : index
    %c0_83 = arith.constant 0 : index
    %299 = vector.load %arg3[%c0_82, %c0_83] : memref<2x8xi32, #tpu.memory_space<vmem>>, vector<2x8xi32>
    tpu.vector_store %arg3[%c0_82, %c0_83], %271 {strides = array<i32>} : memref<2x8xi32, #tpu.memory_space<vmem>>, vector<2x8xi32>,
    return
  }
  func.func @transform_0(%arg0: i32) -> (i32, i32) {
    %c0_i32 = arith.constant 0 : i32
    %c0_i32_0 = arith.constant 0 : i32
    return %arg0, %c0_i32 : i32, i32
  }
  func.func @transform_1(%arg0: i32) -> (i32, i32) {
    %c0_i32 = arith.constant 0 : i32
    %c0_i32_0 = arith.constant 0 : i32
    return %arg0, %c0_i32 : i32, i32
  }
  func.func @transform_2(%arg0: i32) -> (i32, i32) {
    %c0_i32 = arith.constant 0 : i32
    %c0_i32_0 = arith.constant 0 : i32
    return %arg0, %c0_i32 : i32, i32
  }
  func.func @transform_3(%arg0: i32) -> (i32, i32, i32) {
    %c0_i32 = arith.constant 0 : i32
    %c0_i32_0 = arith.constant 0 : i32
    %c0_i32_1 = arith.constant 0 : i32
    return %arg0, %c0_i32, %c0_i32_0 : i32, i32, i32
  }
  func.func @transform_4(%arg0: i32) -> (i32, i32, i32) {
    %c0_i32 = arith.constant 0 : i32
    %c0_i32_0 = arith.constant 0 : i32
    %c0_i32_1 = arith.constant 0 : i32
    return %arg0, %c0_i32, %c0_i32_0 : i32, i32, i32
  }
}

</mosaic_0001>

<bundles_post_ra>
// kernel: tpu_custom_call.1
= control target key start
LH: loop header
LB: loop body
LE: loop exit
PB: predicated region body
PF: predicated region fallthrough
CT: control target
= control target key end

     0   :  { %10 = vsyncpa [#allocation3], 0  ;;  %s2622_s0 = inlined_call_operand.hbm [shape: f32[6,16], index: 0, kind: input, shape index: {}]   ;;  %s2623_s1 = inlined_call_operand.vmem [shape: s32[2,1], index: 1, kind: input, shape index: {}]   ;;  %s2624_s2 = inlined_call_operand.hbm [shape: s32[2,8], index: 2, kind: output, shape index: {0}]   ;;  %s2625_s3 = inlined_call_operand.vmem [shape: f32[1,6,6], index: 3, kind: output, shape index: {1}]   ;;  %s2626_s4 = inlined_call_operand.vmem [shape: f32[1,6,1], index: 4, kind: output, shape index: {2}]  }
   0x1   :  { %11 = vsyncpa [#allocation4], 0  ;;  %s2328_s15 = smov [#allocation2]   ;;  %s2280_s19 = scalar_lea.hbm %s2622_s0, 128 }
   0x2   :  { %s18_s16 = sshll.u32 %s2328_s15, 4  ;;  %p2281_p0 = scmp.ne.s32.totalorder %s2622_s0, %s2280_s19  ;;  %s19_s16 = int_to_ptr.vmem [resolvable:$true] %s18_s16 }
   0x3   :  { %p2284_p1 = scmp.lt.u32.totalorder %s2280_s19, %s2622_s0 }
   0x5   :  { %p2286_p2 = pnand %p2284_p1, %p2281_p0 }
   0x7   :  { %2289 = shalt.err (!%p2286_p2)
}
   0x8   :  { %s2290_s24 = scalar_lea.vmem %s19_s16, 128  ;;  %p2295_p4 = scmp.lt.s32.totalorder %s19_s16, %s19_s16 }
   0x9   :  { %p2291_p3 = scmp.ne.s32.totalorder %s19_s16, %s2290_s24  ;;  %p2296_p5 = scmp.lt.s32.totalorder %s2290_s24, %s2290_s24 }
   0xb   :  { %p2297_p6 = por %p2296_p5, %p2295_p4 }
   0xd   :  { %p2298_p7 = pnand %p2297_p6, %p2291_p3 }
   0xf   :  { %2301 = shalt.err (!%p2298_p7)
}
  0x10   :  { %21 = dma.hbm_to_vmem [thread:$0]  %s2622_s0, 128, %s19_s16, [#allocation3]  }
  0x11   :  { %2324 = dma.done.wait [#allocation3], 128  }
  0x12   :  { %2325 = vsyncadd [#allocation3], 4294967168  ;;  %v2329_v0 = vmov 0   ;;  %v2330_v1 = vmov 0.0   ;;  %v110_v2 = vlaneseq  ;;  %vm2331_vm0 = vmmov 0  }
  0x13   :  { %2278 = vset.pattern.permute.xlu0 %v2329_v0  ;;  %2163 = vmatprep.subr.mxu1 %v2330_v1  ;;  %v2378_v6 = vld [vmem:[#allocation2] sm:$0x3f]  ;;  %vm133_vm1 = vcmask 1045504   ;;  %vm129_vm4 = vcmask 48128   ;;  %vm220_vm9 = vcmask 1041408   ;;  %vm216_vm11 = vcmask 15360  }
  0x14   :  { %2165 = vmatprep.mubr.msk.f32.mxu1 %vm2331_vm0, %v2330_v1  ;;  %2158 = vmatprep.subr.mxu0 %v2330_v1  ;;  %v111_v3 = vshrl.u32 %v110_v2, 7  ;;  %v2374_v4 = vand.u32 127, %v110_v2  ;;  %v207_v7 = vld [vmem:[%s2623_s1] sm:$0x3]  ;;  %v128_v9 = vmul.f32 %v2378_v6, %v2378_v6  ;;  %vm28_vm12 = vcmask 130048  }
  0x15   :  { %2160 = vmatprep.mubr.msk.f32.mxu0 %vm2331_vm0, %v2330_v1  ;;  %2279 = vset.pattern.permute.xlu1 %v2329_v0  ;;  %vm104_vm13 = vcmask 128000   ;;  %vm102_vm14 = vcmask 46080   ;;  %vm455_vm15 = vcmask 123904  }
  0x16   :  { %v114_v5 = vmul.u32 3, %v111_v3  ;;  %210 = vperm.xlu0 %2278, %v207_v7   ;;  %2164 = vmatpush3.msk.msra.mxu1 %vm133_vm1, %v128_v9  ;;  %v121_v11 = vmul.u32 3, %v2374_v4 }
  0x17   :  { %2168 = vmatprep.subr.mxu1 %v2330_v1  ;;  %2159 = vmatpush3.xpose.msk.msra.mxu0 %vm28_vm12, %v2378_v6 }
  0x18   :  { %vm115_vm2 = vcmp.ge.s32.totalorder %v2374_v4, %v114_v5  ;;  %v116_v8 = vadd.s32 3, %v114_v5  ;;  %v123_v12 = vadd.s32 3, %v121_v11  ;;  %vm122_vm6 = vcmp.ge.s32.totalorder %v111_v3, %v121_v11  ;;  %2173 = vmatprep.subr.mxu0 %v2330_v1 }
  0x1a   :  { %vm117_vm3 = vcmp.lt.s32.totalorder %v2374_v4, %v116_v8  ;;  %vm124_vm7 = vcmp.lt.s32.totalorder %v111_v3, %v123_v12  ;;  %2161 = vmatmul.mubr.msk.f32.vlgmr.msra.gmra.mrb[0].mxu0 %vm28_vm12, %v2378_v6  ;;  %vm735_vm12 = vcmp.eq.s32.totalorder %v2374_v4, 2 }
  0x1b   :  { %vm118_vm5 = vmand %vm115_vm2, %vm117_vm3  ;;  %2175 = vmatprep.mubr.msk.f32.mxu0 %vm2331_vm0, %v2330_v1 }
  0x1c   :  { %v2389_v10 = vsel %vm118_vm5, 1.0, %v2330_v1  ;;  %vm125_vm8 = vmand %vm122_vm6, %vm124_vm7 }
  0x1d   :  { %2166 = vmatmul.mubr.msk.f32.vlgmr.msra.gmra.mrb[0].mxu1 %vm129_vm4, %v2389_v10  ;;  %v2402_v14 = vsel %vm125_vm8, 1.0, %v2330_v1  ;;  %vm208_vm8 = vcmp.eq.s32.totalorder %v2374_v4, 0 }
  0x1e   :  { %2170 = vmatprep.mubr.msk.f32.mxu1 %vm2331_vm0, %v2330_v1 }
  0x95   :  { %v2397_v13 = vpop.permute.xlu0 %210 }
  0x96   :  { %vm213_vm10 = vcmp.eq.s32.totalorder %v2374_v4, %v2397_v13 }
  0x97   :  { %v2063_v15 = vsel %vm213_vm10, 1.0, %v2330_v1  ;;  %vm476_vm10 = vcmp.eq.s32.totalorder %v2374_v4, 1 }
  0x98   :  { %2169 = vmatpush3.msk.msra.mxu1 %vm220_vm9, %v2063_v15 }
  0x99   :  { %2171 = vmatmul.mubr.msk.f32.vlgmr.msra.gmra.mrb[2].mxu1 %vm216_vm11, %v2402_v14  ;;  %2178 = vmatprep.subr.mxu1 %v2330_v1 }
  0x9a   :  { %2180 = vmatprep.mubr.msk.f32.mxu1 %vm2331_vm0, %v2330_v1 }
  0xed   :  { %v98_v22 = vpop.f32.mrb[0].mxu0 }
  0xee   :  { %103 = vst.msk [vmem:[%s2625_s3] sm:$0x3f] %vm102_vm14, %v98_v22  ;;  %v2162_v23 = vpop.f32.mrb[1].mxu0  ;;  %s2332_s3 = smov [#allocation5]  }
  0xef   :  { %s2040_s29 = sshll.u32 %s2332_s3, 4  ;;  %s2041_s29 = int_to_ptr.vmem [resolvable:$true] %s2040_s29 }
  0xf0   :  { %v2411_v16 = vpop.f32.mrb[0].mxu1  ;;  %s2302_s6 = scalar_lea.vmem %s2041_s29, 32  ;;  %p2307_p9 = scmp.lt.s32.totalorder %s2041_s29, %s2041_s29 }
  0xf1   :  { %v2167_v17 = vpop.f32.mrb[1].mxu1  ;;  %p2303_p8 = scmp.ne.s32.totalorder %s2041_s29, %s2302_s6  ;;  %p2308_p10 = scmp.lt.s32.totalorder %s2302_s6, %s2302_s6 }
  0xf3   :  { %p2309_p11 = por %p2308_p10, %p2307_p9 }
  0xf5   :  { %p2310_p12 = pnand %p2309_p11, %p2303_p8 }
 0x16c   :  { %v290_v18 = vpop.f32.mrb[2].mxu1 }
 0x16d   :  { %v294_v19 = vmul.f32 %v290_v18, %v2378_v6  ;;  %v2172_v20 = vpop.f32.mrb[3].mxu1 }
 0x16f   :  { %v295_v21 = vsel %vm104_vm13, %v294_v19, 0.0 }
 0x170   :  { %296 = vadd.xlane.f32.xlu0 %v295_v21 }
 0x1fd   :  { %v297_v24 = vpop.xlane.xlu0 %296 }
 0x1fe   :  { %v298_v25 = vmul.f32 %v297_v24, %v2378_v6  ;;  %v372_v26 = vmul.f32 %v297_v24, %v297_v24 }
 0x200   :  { %2174 = vmatpush3.msk.msra.mxu0 %vm133_vm1, %v298_v25  ;;  %2179 = vmatpush3.msk.msra.mxu1 %vm133_vm1, %v372_v26  ;;  %v212_v25 = vsel %vm208_vm8, %v2397_v13, 0 }
 0x201   :  { %2176 = vmatmul.mubr.msk.f32.vlgmr.msra.gmra.mrb[2].mxu0 %vm129_vm4, %v2389_v10  ;;  %2181 = vmatmul.mubr.msk.f32.vlgmr.msra.gmra.mrb[4].mxu1 %vm129_vm4, %v2389_v10 }
 0x202   :  { %2183 = vmatprep.subr.mxu0 %v2330_v1  ;;  %2185 = vmatprep.mubr.msk.f32.mxu0 %vm2331_vm0, %v2330_v1 }
 0x203   :  { %2188 = vmatprep.subr.mxu1 %v2330_v1  ;;  %2190 = vmatprep.mubr.msk.f32.mxu1 %vm2331_vm0, %v2330_v1 }
 0x2d4   :  { %v368_v27 = vpop.f32.mrb[2].mxu0  ;;  %v442_v28 = vpop.f32.mrb[4].mxu1 }
 0x2d5   :  { %v446_v29 = vmul.f32 2.0, %v368_v27  ;;  %450 = vperm.xlu1 %2279, %v442_v28   ;;  %v2182_v30 = vpop.f32.mrb[5].mxu1  ;;  %v2177_v31 = vpop.f32.mrb[3].mxu0 }
 0x2d7   :  { %v447_v32 = vsub.f32 %v2411_v16, %v446_v29 }
 0x354   :  { %v451_v33 = vpop.permute.xlu1 %450 }
 0x355   :  { %v453_v34 = vadd.f32 %v451_v33, %v447_v32 }
 0x357   :  { %v454_v35 = vmin.f32 %v453_v34, 1e+10 }
 0x359   :  { %v456_v36 = vsel %vm455_vm15, %v454_v35, -inf }
 0x35a   :  { %457 = vmax.xlane.f32.xlu1 %v456_v36 }
 0x3e7   :  { %v458_v37 = vpop.xlane.xlu1 %457 }
 0x3e8   :  { %vm459_vm2 = vcmp.eq.f32.partialorder %v454_v35, %v458_v37 }
 0x3e9   :  { %v460_v38 = vsel %vm459_vm2, %v2374_v4, 16 }
 0x3ea   :  { %v461_v39 = vsel %vm455_vm15, %v460_v38, 2147483647 }
 0x3eb   :  { %v463_v40 = vshra.s32 %v461_v39, 16  ;;  %v462_v42 = vand.u32 65535, %v461_v39 }
 0x3ed   :  { %v465_v41 = vcvt.s32.f32 %v463_v40  ;;  %v464_v44 = vcvt.s32.f32 %v462_v42 }
 0x3ef   :  { %466 = vmin.xlane.f32.xlu0 %v465_v41 }
 0x47c   :  { %v467_v43 = vpop.xlane.xlu0 %466 }
 0x47d   :  { %vm468_vm3 = vcmp.eq.f32.partialorder %v465_v41, %v467_v43  ;;  %v473_v46 = vcvt.f32.s32 %v467_v43 }
 0x47e   :  { %v469_v45 = vsel %vm468_vm3, %v464_v44, inf }
 0x47f   :  { %470 = vmin.xlane.f32.xlu0 %v469_v45  ;;  %v474_v48 = vshll.u32 %v473_v46, 16 }
 0x50c   :  { %v471_v47 = vpop.xlane.xlu0 %470 }
 0x50d   :  { %v472_v49 = vcvt.f32.s32 %v471_v47 }
 0x50f   :  { %v475_v50 = vadd.s32 %v474_v48, %v472_v49 }
 0x511   :  { %vm478_vm5 = vcmp.eq.s32.totalorder %v2374_v4, %v475_v50  ;;  %v477_v27 = vsel %vm476_vm10, %v475_v50, %v212_v25  ;;  %vm1253_vm10 = vcmp.eq.s32.totalorder %v2374_v4, 4 }
 0x512   :  { %v2070_v51 = vsel %vm478_vm5, 1.0, %v2330_v1  ;;  %vm994_vm5 = vcmp.eq.s32.totalorder %v2374_v4, 3 }
 0x513   :  { %2184 = vmatpush3.msk.msra.mxu0 %vm220_vm9, %v2070_v51 }
 0x514   :  { %2186 = vmatmul.mubr.msk.f32.vlgmr.msra.gmra.mrb[4].mxu0 %vm216_vm11, %v2402_v14  ;;  %2193 = vmatprep.subr.mxu0 %v2330_v1 }
 0x515   :  { %2195 = vmatprep.mubr.msk.f32.mxu0 %vm2331_vm0, %v2330_v1 }
 0x5e7   :  { %v550_v52 = vpop.f32.mrb[4].mxu0 }
 0x5e8   :  { %v554_v53 = vmul.f32 %v550_v52, %v2378_v6  ;;  %v2187_v54 = vpop.f32.mrb[5].mxu0 }
 0x5ea   :  { %v555_v55 = vsel %vm104_vm13, %v554_v53, 0.0 }
 0x5eb   :  { %556 = vadd.xlane.f32.xlu1 %v555_v55 }
 0x678   :  { %v557_v56 = vpop.xlane.xlu1 %556 }
 0x679   :  { %v558_v57 = vmul.f32 %v557_v56, %v2378_v6  ;;  %v632_v58 = vmul.f32 %v557_v56, %v557_v56 }
 0x67b   :  { %2189 = vmatpush3.msk.msra.mxu1 %vm133_vm1, %v558_v57  ;;  %2194 = vmatpush3.msk.msra.mxu0 %vm133_vm1, %v632_v58 }
 0x67c   :  { %2191 = vmatmul.mubr.msk.f32.vlgmr.msra.gmra.mrb[6].mxu1 %vm129_vm4, %v2389_v10  ;;  %2196 = vmatmul.mubr.msk.f32.vlgmr.msra.gmra.mrb[6].mxu0 %vm129_vm4, %v2389_v10 }
 0x67d   :  { %2198 = vmatprep.subr.mxu1 %v2330_v1  ;;  %2200 = vmatprep.mubr.msk.f32.mxu1 %vm2331_vm0, %v2330_v1 }
 0x67e   :  { %2203 = vmatprep.subr.mxu0 %v2330_v1  ;;  %2205 = vmatprep.mubr.msk.f32.mxu0 %vm2331_vm0, %v2330_v1 }
 0x74f   :  { %v628_v59 = vpop.f32.mrb[6].mxu1  ;;  %v702_v60 = vpop.f32.mrb[6].mxu0 }
 0x750   :  { %v706_v61 = vmul.f32 2.0, %v628_v59  ;;  %710 = vperm.xlu0 %2278, %v702_v60   ;;  %v2197_v62 = vpop.f32.mrb[7].mxu0  ;;  %v2192_v63 = vpop.f32.mrb[7].mxu1 }
 0x752   :  { %v707_v0 = vsub.f32 %v2411_v16, %v706_v61 }
 0x7cf   :  { %v711_v2 = vpop.permute.xlu0 %710 }
 0x7d0   :  { %v713_v3 = vadd.f32 %v711_v2, %v707_v0 }
 0x7d2   :  { %v714_v5 = vmin.f32 %v454_v35, %v713_v3 }
 0x7d4   :  { %v715_v7 = vsel %vm455_vm15, %v714_v5, -inf }
 0x7d5   :  { %716 = vmax.xlane.f32.xlu1 %v715_v7 }
 0x862   :  { %v717_v8 = vpop.xlane.xlu1 %716 }
 0x863   :  { %vm718_vm6 = vcmp.eq.f32.partialorder %v714_v5, %v717_v8 }
 0x864   :  { %v719_v9 = vsel %vm718_vm6, %v2374_v4, 16 }
 0x865   :  { %v720_v11 = vsel %vm455_vm15, %v719_v9, 2147483647 }
 0x866   :  { %v722_v12 = vshra.s32 %v720_v11, 16  ;;  %v721_v17 = vand.u32 65535, %v720_v11 }
 0x868   :  { %v724_v15 = vcvt.s32.f32 %v722_v12  ;;  %v723_v19 = vcvt.s32.f32 %v721_v17 }
 0x86a   :  { %725 = vmin.xlane.f32.xlu1 %v724_v15 }
 0x8f7   :  { %v726_v18 = vpop.xlane.xlu1 %725 }
 0x8f8   :  { %vm727_vm7 = vcmp.eq.f32.partialorder %v724_v15, %v726_v18  ;;  %v732_v21 = vcvt.f32.s32 %v726_v18 }
 0x8f9   :  { %v728_v20 = vsel %vm727_vm7, %v723_v19, inf }
 0x8fa   :  { %729 = vmin.xlane.f32.xlu1 %v728_v20  ;;  %v733_v23 = vshll.u32 %v732_v21, 16 }
 0x987   :  { %v730_v22 = vpop.xlane.xlu1 %729 }
 0x988   :  { %v731_v24 = vcvt.f32.s32 %v730_v22 }
 0x98a   :  { %v734_v26 = vadd.s32 %v733_v23, %v731_v24 }
 0x98c   :  { %v736_v28 = vsel %vm735_vm12, %v734_v26, %v477_v27  ;;  %vm737_vm14 = vcmp.eq.s32.totalorder %v2374_v4, %v734_v26 }
 0x98d   :  { %v2077_v29 = vsel %vm737_vm14, 1.0, %v2330_v1 }
 0x98e   :  { %2199 = vmatpush3.msk.msra.mxu1 %vm220_vm9, %v2077_v29 }
 0x98f   :  { %2201 = vmatmul.mubr.msk.f32.vlgmr.msra.gmra.mrb[8].mxu1 %vm216_vm11, %v2402_v14  ;;  %2208 = vmatprep.subr.mxu1 %v2330_v1 }
 0x990   :  { %2210 = vmatprep.mubr.msk.f32.mxu1 %vm2331_vm0, %v2330_v1 }
 0xa62   :  { %v809_v30 = vpop.f32.mrb[8].mxu1 }
 0xa63   :  { %v813_v13 = vmul.f32 %v809_v30, %v2378_v6  ;;  %v2202_v31 = vpop.f32.mrb[9].mxu1 }
 0xa65   :  { %v814_v32 = vsel %vm104_vm13, %v813_v13, 0.0 }
 0xa66   :  { %815 = vadd.xlane.f32.xlu1 %v814_v32 }
 0xaf3   :  { %v816_v33 = vpop.xlane.xlu1 %815 }
 0xaf4   :  { %v817_v34 = vmul.f32 %v816_v33, %v2378_v6  ;;  %v891_v35 = vmul.f32 %v816_v33, %v816_v33 }
 0xaf6   :  { %2204 = vmatpush3.msk.msra.mxu0 %vm133_vm1, %v817_v34  ;;  %2209 = vmatpush3.msk.msra.mxu1 %vm133_vm1, %v891_v35 }
 0xaf7   :  { %2206 = vmatmul.mubr.msk.f32.vlgmr.msra.gmra.mrb[8].mxu0 %vm129_vm4, %v2389_v10  ;;  %2211 = vmatmul.mubr.msk.f32.vlgmr.msra.gmra.mrb[10].mxu1 %vm129_vm4, %v2389_v10 }
 0xaf8   :  { %2213 = vmatprep.subr.mxu0 %v2330_v1  ;;  %2215 = vmatprep.mubr.msk.f32.mxu0 %vm2331_vm0, %v2330_v1 }
 0xaf9   :  { %2218 = vmatprep.subr.mxu1 %v2330_v1  ;;  %2220 = vmatprep.mubr.msk.f32.mxu1 %vm2331_vm0, %v2330_v1 }
 0xbca   :  { %v887_v36 = vpop.f32.mrb[8].mxu0  ;;  %v961_v37 = vpop.f32.mrb[10].mxu1 }
 0xbcb   :  { %v965_v38 = vmul.f32 2.0, %v887_v36  ;;  %969 = vperm.xlu1 %2279, %v961_v37   ;;  %v2212_v39 = vpop.f32.mrb[11].mxu1  ;;  %v2207_v40 = vpop.f32.mrb[9].mxu0 }
 0xbcd   :  { %v966_v41 = vsub.f32 %v2411_v16, %v965_v38 }
 0xc4a   :  { %v970_v42 = vpop.permute.xlu1 %969 }
 0xc4b   :  { %v972_v43 = vadd.f32 %v970_v42, %v966_v41 }
 0xc4d   :  { %v973_v44 = vmin.f32 %v714_v5, %v972_v43 }
 0xc4f   :  { %v974_v45 = vsel %vm455_vm15, %v973_v44, -inf }
 0xc50   :  { %975 = vmax.xlane.f32.xlu0 %v974_v45 }
 0xcdd   :  { %v976_v46 = vpop.xlane.xlu0 %975 }
 0xcde   :  { %vm977_vm2 = vcmp.eq.f32.partialorder %v973_v44, %v976_v46 }
 0xcdf   :  { %v978_v47 = vsel %vm977_vm2, %v2374_v4, 16 }
 0xce0   :  { %v979_v48 = vsel %vm455_vm15, %v978_v47, 2147483647 }
 0xce1   :  { %v981_v49 = vshra.s32 %v979_v48, 16  ;;  %v980_v51 = vand.u32 65535, %v979_v48 }
 0xce3   :  { %v983_v50 = vcvt.s32.f32 %v981_v49  ;;  %v982_v53 = vcvt.s32.f32 %v980_v51 }
 0xce5   :  { %984 = vmin.xlane.f32.xlu1 %v983_v50 }
 0xd72   :  { %v985_v52 = vpop.xlane.xlu1 %984 }
 0xd73   :  { %vm986_vm3 = vcmp.eq.f32.partialorder %v983_v50, %v985_v52  ;;  %v991_v55 = vcvt.f32.s32 %v985_v52 }
 0xd74   :  { %v987_v54 = vsel %vm986_vm3, %v982_v53, inf  ;;  %vm1512_vm3 = vcmp.eq.s32.totalorder %v2374_v4, 5 }
 0xd75   :  { %988 = vmin.xlane.f32.xlu0 %v987_v54  ;;  %v992_v57 = vshll.u32 %v991_v55, 16 }
 0xe02   :  { %v989_v56 = vpop.xlane.xlu0 %988 }
 0xe03   :  { %v990_v58 = vcvt.f32.s32 %v989_v56 }
 0xe05   :  { %v993_v59 = vadd.s32 %v992_v57, %v990_v58 }
 0xe07   :  { %v995_v60 = vsel %vm994_vm5, %v993_v59, %v736_v28  ;;  %vm996_vm6 = vcmp.eq.s32.totalorder %v2374_v4, %v993_v59 }
 0xe08   :  { %v2084_v61 = vsel %vm996_vm6, 1.0, %v2330_v1 }
 0xe09   :  { %2214 = vmatpush3.msk.msra.mxu0 %vm220_vm9, %v2084_v61 }
 0xe0a   :  { %2216 = vmatmul.mubr.msk.f32.vlgmr.msra.gmra.mrb[10].mxu0 %vm216_vm11, %v2402_v14  ;;  %2223 = vmatprep.subr.mxu0 %v2330_v1 }
 0xe0b   :  { %2225 = vmatprep.mubr.msk.f32.mxu0 %vm2331_vm0, %v2330_v1 }
 0xedd   :  { %v1068_v62 = vpop.f32.mrb[10].mxu0 }
 0xede   :  { %v1072_v63 = vmul.f32 %v1068_v62, %v2378_v6  ;;  %v2217_v0 = vpop.f32.mrb[11].mxu0 }
 0xee0   :  { %v1073_v2 = vsel %vm104_vm13, %v1072_v63, 0.0 }
 0xee1   :  { %1074 = vadd.xlane.f32.xlu0 %v1073_v2 }
 0xf6e   :  { %v1075_v3 = vpop.xlane.xlu0 %1074 }
 0xf6f   :  { %v1076_v5 = vmul.f32 %v1075_v3, %v2378_v6  ;;  %v1150_v7 = vmul.f32 %v1075_v3, %v1075_v3 }
 0xf71   :  { %2219 = vmatpush3.msk.msra.mxu1 %vm133_vm1, %v1076_v5  ;;  %2224 = vmatpush3.msk.msra.mxu0 %vm133_vm1, %v1150_v7 }
 0xf72   :  { %2221 = vmatmul.mubr.msk.f32.vlgmr.msra.gmra.mrb[12].mxu1 %vm129_vm4, %v2389_v10  ;;  %2226 = vmatmul.mubr.msk.f32.vlgmr.msra.gmra.mrb[12].mxu0 %vm129_vm4, %v2389_v10 }
 0xf73   :  { %2228 = vmatprep.subr.mxu1 %v2330_v1  ;;  %2230 = vmatprep.mubr.msk.f32.mxu1 %vm2331_vm0, %v2330_v1 }
 0xf74   :  { %2233 = vmatprep.subr.mxu0 %v2330_v1  ;;  %2235 = vmatprep.mubr.msk.f32.mxu0 %vm2331_vm0, %v2330_v1 }
0x1045   :  { %v1146_v8 = vpop.f32.mrb[12].mxu1  ;;  %v1220_v9 = vpop.f32.mrb[12].mxu0 }
0x1046   :  { %v1224_v11 = vmul.f32 2.0, %v1146_v8  ;;  %1228 = vperm.xlu0 %2278, %v1220_v9   ;;  %v2227_v12 = vpop.f32.mrb[13].mxu0  ;;  %v2222_v15 = vpop.f32.mrb[13].mxu1 }
0x1048   :  { %v1225_v17 = vsub.f32 %v2411_v16, %v1224_v11 }
0x10c5   :  { %v1229_v18 = vpop.permute.xlu0 %1228 }
0x10c6   :  { %v1231_v19 = vadd.f32 %v1229_v18, %v1225_v17 }
0x10c8   :  { %v1232_v20 = vmin.f32 %v973_v44, %v1231_v19 }
0x10ca   :  { %v1233_v21 = vsel %vm455_vm15, %v1232_v20, -inf }
0x10cb   :  { %1234 = vmax.xlane.f32.xlu1 %v1233_v21 }
0x1158   :  { %v1235_v22 = vpop.xlane.xlu1 %1234 }
0x1159   :  { %vm1236_vm7 = vcmp.eq.f32.partialorder %v1232_v20, %v1235_v22 }
0x115a   :  { %v1237_v23 = vsel %vm1236_vm7, %v2374_v4, 16 }
0x115b   :  { %v1238_v24 = vsel %vm455_vm15, %v1237_v23, 2147483647 }
0x115c   :  { %v1240_v25 = vshra.s32 %v1238_v24, 16  ;;  %v1239_v27 = vand.u32 65535, %v1238_v24 }
0x115e   :  { %v1242_v26 = vcvt.s32.f32 %v1240_v25  ;;  %v1241_v29 = vcvt.s32.f32 %v1239_v27 }
0x1160   :  { %1243 = vmin.xlane.f32.xlu1 %v1242_v26 }
0x11ed   :  { %v1244_v28 = vpop.xlane.xlu1 %1243 }
0x11ee   :  { %vm1245_vm8 = vcmp.eq.f32.partialorder %v1242_v26, %v1244_v28  ;;  %v1250_v13 = vcvt.f32.s32 %v1244_v28 }
0x11ef   :  { %v1246_v30 = vsel %vm1245_vm8, %v1241_v29, inf  ;;  %vm1771_vm8 = vcmp.eq.s32.totalorder %v2374_v4, 6 }
0x11f0   :  { %1247 = vmin.xlane.f32.xlu1 %v1246_v30  ;;  %v1251_v32 = vshll.u32 %v1250_v13, 16 }
0x127d   :  { %v1248_v31 = vpop.xlane.xlu1 %1247 }
0x127e   :  { %v1249_v33 = vcvt.f32.s32 %v1248_v31 }
0x1280   :  { %v1252_v34 = vadd.s32 %v1251_v32, %v1249_v33 }
0x1282   :  { %v1254_v35 = vsel %vm1253_vm10, %v1252_v34, %v995_v60  ;;  %vm1255_vm12 = vcmp.eq.s32.totalorder %v2374_v4, %v1252_v34 }
0x1283   :  { %v2091_v36 = vsel %vm1255_vm12, 1.0, %v2330_v1 }
0x1284   :  { %2229 = vmatpush3.msk.msra.mxu1 %vm220_vm9, %v2091_v36 }
0x1285   :  { %2231 = vmatmul.mubr.msk.f32.vlgmr.msra.gmra.mrb[14].mxu1 %vm216_vm11, %v2402_v14  ;;  %2238 = vmatprep.subr.mxu1 %v2330_v1 }
0x1286   :  { %2240 = vmatprep.mubr.msk.f32.mxu1 %vm2331_vm0, %v2330_v1 }
0x1358   :  { %v1327_v37 = vpop.f32.mrb[14].mxu1 }
0x1359   :  { %v1331_v38 = vmul.f32 %v1327_v37, %v2378_v6  ;;  %v2232_v39 = vpop.f32.mrb[15].mxu1 }
0x135b   :  { %v1332_v40 = vsel %vm104_vm13, %v1331_v38, 0.0 }
0x135c   :  { %1333 = vadd.xlane.f32.xlu1 %v1332_v40 }
0x13e9   :  { %v1334_v41 = vpop.xlane.xlu1 %1333 }
0x13ea   :  { %v1335_v42 = vmul.f32 %v1334_v41, %v2378_v6  ;;  %v1409_v43 = vmul.f32 %v1334_v41, %v1334_v41 }
0x13ec   :  { %2234 = vmatpush3.msk.msra.mxu0 %vm133_vm1, %v1335_v42  ;;  %2239 = vmatpush3.msk.msra.mxu1 %vm133_vm1, %v1409_v43 }
0x13ed   :  { %2236 = vmatmul.mubr.msk.f32.vlgmr.msra.gmra.mrb[14].mxu0 %vm129_vm4, %v2389_v10  ;;  %2241 = vmatmul.mubr.msk.f32.vlgmr.msra.gmra.mrb[16].mxu1 %vm129_vm4, %v2389_v10 }
0x13ee   :  { %2243 = vmatprep.subr.mxu0 %v2330_v1  ;;  %2245 = vmatprep.mubr.msk.f32.mxu0 %vm2331_vm0, %v2330_v1 }
0x13ef   :  { %2248 = vmatprep.subr.mxu1 %v2330_v1  ;;  %2250 = vmatprep.mubr.msk.f32.mxu1 %vm2331_vm0, %v2330_v1 }
0x14c0   :  { %v1405_v44 = vpop.f32.mrb[14].mxu0  ;;  %v1479_v45 = vpop.f32.mrb[16].mxu1 }
0x14c1   :  { %v1483_v46 = vmul.f32 2.0, %v1405_v44  ;;  %1487 = vperm.xlu0 %2278, %v1479_v45   ;;  %v2242_v47 = vpop.f32.mrb[17].mxu1  ;;  %v2237_v48 = vpop.f32.mrb[15].mxu0 }
0x14c3   :  { %v1484_v49 = vsub.f32 %v2411_v16, %v1483_v46 }
0x1540   :  { %v1488_v50 = vpop.permute.xlu0 %1487 }
0x1541   :  { %v1490_v51 = vadd.f32 %v1488_v50, %v1484_v49 }
0x1543   :  { %v1491_v52 = vmin.f32 %v1232_v20, %v1490_v51 }
0x1545   :  { %v1492_v53 = vsel %vm455_vm15, %v1491_v52, -inf }
0x1546   :  { %1493 = vmax.xlane.f32.xlu1 %v1492_v53 }
0x15d3   :  { %v1494_v54 = vpop.xlane.xlu1 %1493 }
0x15d4   :  { %vm1495_vm14 = vcmp.eq.f32.partialorder %v1491_v52, %v1494_v54 }
0x15d5   :  { %v1496_v55 = vsel %vm1495_vm14, %v2374_v4, 16 }
0x15d6   :  { %v1497_v56 = vsel %vm455_vm15, %v1496_v55, 2147483647 }
0x15d7   :  { %v1499_v57 = vshra.s32 %v1497_v56, 16  ;;  %v1498_v59 = vand.u32 65535, %v1497_v56 }
0x15d9   :  { %v1501_v58 = vcvt.s32.f32 %v1499_v57  ;;  %v1500_v61 = vcvt.s32.f32 %v1498_v59 }
0x15db   :  { %1502 = vmin.xlane.f32.xlu0 %v1501_v58 }
0x1668   :  { %v1503_v60 = vpop.xlane.xlu0 %1502 }
0x1669   :  { %vm1504_vm2 = vcmp.eq.f32.partialorder %v1501_v58, %v1503_v60  ;;  %v1509_v63 = vcvt.f32.s32 %v1503_v60 }
0x166a   :  { %v1505_v62 = vsel %vm1504_vm2, %v1500_v61, inf }
0x166b   :  { %1506 = vmin.xlane.f32.xlu1 %v1505_v62  ;;  %v1510_v2 = vshll.u32 %v1509_v63, 16 }
0x16f8   :  { %v1507_v0 = vpop.xlane.xlu1 %1506 }
0x16f9   :  { %v1508_v3 = vcvt.f32.s32 %v1507_v0 }
0x16fb   :  { %v1511_v5 = vadd.s32 %v1510_v2, %v1508_v3 }
0x16fd   :  { %v1513_v7 = vsel %vm1512_vm3, %v1511_v5, %v1254_v35  ;;  %vm1514_vm5 = vcmp.eq.s32.totalorder %v2374_v4, %v1511_v5  ;;  %v105_v5 = vsel %vm104_vm13, %v2378_v6, 0.0 }
0x16fe   :  { %v2098_v8 = vsel %vm1514_vm5, 1.0, %v2330_v1 }
0x16ff   :  { %2244 = vmatpush3.msk.msra.mxu0 %vm220_vm9, %v2098_v8 }
0x1700   :  { %2246 = vmatmul.mubr.msk.f32.vlgmr.msra.gmra.mrb[16].mxu0 %vm216_vm11, %v2402_v14  ;;  %2253 = vmatprep.subr.mxu0 %v2330_v1 }
0x1701   :  { %2255 = vmatprep.mubr.msk.f32.mxu0 %vm2331_vm0, %v2330_v1 }
0x17d3   :  { %v1586_v9 = vpop.f32.mrb[16].mxu0 }
0x17d4   :  { %v1590_v11 = vmul.f32 %v1586_v9, %v2378_v6  ;;  %v2247_v12 = vpop.f32.mrb[17].mxu0 }
0x17d6   :  { %v1591_v15 = vsel %vm104_vm13, %v1590_v11, 0.0 }
0x17d7   :  { %1592 = vadd.xlane.f32.xlu1 %v1591_v15 }
0x1864   :  { %v1593_v17 = vpop.xlane.xlu1 %1592 }
0x1865   :  { %v1594_v18 = vmul.f32 %v1593_v17, %v2378_v6  ;;  %v1668_v19 = vmul.f32 %v1593_v17, %v1593_v17 }
0x1867   :  { %2249 = vmatpush3.msk.msra.mxu1 %vm133_vm1, %v1594_v18  ;;  %2254 = vmatpush3.msk.msra.mxu0 %vm133_vm1, %v1668_v19 }
0x1868   :  { %2251 = vmatmul.mubr.msk.f32.vlgmr.msra.gmra.mrb[18].mxu1 %vm129_vm4, %v2389_v10  ;;  %2256 = vmatmul.mubr.msk.f32.vlgmr.msra.gmra.mrb[18].mxu0 %vm129_vm4, %v2389_v10 }
0x1869   :  { %2258 = vmatprep.subr.mxu1 %v2330_v1  ;;  %2260 = vmatprep.mubr.msk.f32.mxu1 %vm2331_vm0, %v2330_v1 }
0x186a   :  { %2263 = vmatprep.subr.mxu0 %v2330_v1  ;;  %2265 = vmatprep.mubr.msk.f32.mxu0 %vm2331_vm0, %v2330_v1 }
0x193b   :  { %v1664_v20 = vpop.f32.mrb[18].mxu1  ;;  %v1738_v21 = vpop.f32.mrb[18].mxu0 }
0x193c   :  { %v1742_v22 = vmul.f32 2.0, %v1664_v20  ;;  %1746 = vperm.xlu1 %2279, %v1738_v21   ;;  %v2257_v23 = vpop.f32.mrb[19].mxu0  ;;  %v2252_v24 = vpop.f32.mrb[19].mxu1 }
0x193e   :  { %v1743_v25 = vsub.f32 %v2411_v16, %v1742_v22 }
0x19bb   :  { %v1747_v26 = vpop.permute.xlu1 %1746 }
0x19bc   :  { %v1749_v27 = vadd.f32 %v1747_v26, %v1743_v25 }
0x19be   :  { %v1750_v28 = vmin.f32 %v1491_v52, %v1749_v27 }
0x19c0   :  { %v1751_v29 = vsel %vm455_vm15, %v1750_v28, -inf }
0x19c1   :  { %1752 = vmax.xlane.f32.xlu1 %v1751_v29 }
0x1a4e   :  { %v1753_v30 = vpop.xlane.xlu1 %1752 }
0x1a4f   :  { %vm1754_vm6 = vcmp.eq.f32.partialorder %v1750_v28, %v1753_v30 }
0x1a50   :  { %v1755_v13 = vsel %vm1754_vm6, %v2374_v4, 16 }
0x1a51   :  { %v1756_v31 = vsel %vm455_vm15, %v1755_v13, 2147483647 }
0x1a52   :  { %v1758_v32 = vshra.s32 %v1756_v31, 16  ;;  %v1757_v34 = vand.u32 65535, %v1756_v31 }
0x1a54   :  { %v1760_v33 = vcvt.s32.f32 %v1758_v32  ;;  %v1759_v36 = vcvt.s32.f32 %v1757_v34 }
0x1a56   :  { %1761 = vmin.xlane.f32.xlu0 %v1760_v33 }
0x1ae3   :  { %v1762_v35 = vpop.xlane.xlu0 %1761 }
0x1ae4   :  { %vm1763_vm7 = vcmp.eq.f32.partialorder %v1760_v33, %v1762_v35  ;;  %v1768_v38 = vcvt.f32.s32 %v1762_v35 }
0x1ae5   :  { %v1764_v37 = vsel %vm1763_vm7, %v1759_v36, inf }
0x1ae6   :  { %1765 = vmin.xlane.f32.xlu0 %v1764_v37  ;;  %v1769_v40 = vshll.u32 %v1768_v38, 16 }
0x1b73   :  { %v1766_v39 = vpop.xlane.xlu0 %1765 }
0x1b74   :  { %v1767_v41 = vcvt.f32.s32 %v1766_v39 }
0x1b76   :  { %v1770_v42 = vadd.s32 %v1769_v40, %v1767_v41 }
0x1b78   :  { %vm1773_vm10 = vcmp.eq.s32.totalorder %v2374_v4, %v1770_v42  ;;  %v1772_v43 = vsel %vm1771_vm8, %v1770_v42, %v1513_v7 }
0x1b79   :  { %v2105_v44 = vsel %vm1773_vm10, 1.0, %v2330_v1 }
0x1b7a   :  { %2259 = vmatpush3.msk.msra.mxu1 %vm220_vm9, %v2105_v44  ;;  %vm2030_vm9 = vcmp.eq.s32.totalorder %v2374_v4, 7 }
0x1b7b   :  { %2261 = vmatmul.mubr.msk.f32.vlgmr.msra.gmra.mrb[20].mxu1 %vm216_vm11, %v2402_v14  ;;  %2268 = vmatprep.subr.mxu1 %v2330_v1  ;;  %vm2032_vm11 = vcmask 58368  }
0x1b7c   :  { %2270 = vmatprep.mubr.msk.f32.mxu1 %vm2331_vm0, %v2330_v1 }
0x1c4e   :  { %v1845_v45 = vpop.f32.mrb[20].mxu1 }
0x1c4f   :  { %v1849_v46 = vmul.f32 %v1845_v45, %v2378_v6  ;;  %v2262_v47 = vpop.f32.mrb[21].mxu1 }
0x1c51   :  { %v1850_v48 = vsel %vm104_vm13, %v1849_v46, 0.0 }
0x1c52   :  { %1851 = vadd.xlane.f32.xlu0 %v1850_v48 }
0x1cdf   :  { %v1852_v49 = vpop.xlane.xlu0 %1851 }
0x1ce0   :  { %v1853_v50 = vmul.f32 %v1852_v49, %v2378_v6  ;;  %v1927_v51 = vmul.f32 %v1852_v49, %v1852_v49 }
0x1ce2   :  { %2264 = vmatpush3.msk.msra.mxu0 %vm133_vm1, %v1853_v50  ;;  %2269 = vmatpush3.msk.msra.mxu1 %vm133_vm1, %v1927_v51 }
0x1ce3   :  { %2266 = vmatmul.mubr.msk.f32.vlgmr.msra.gmra.mrb[20].mxu0 %vm129_vm4, %v2389_v10  ;;  %2271 = vmatmul.mubr.msk.f32.vlgmr.msra.gmra.mrb[22].mxu1 %vm129_vm4, %v2389_v10  ;;  %vm108_vm4 = vcmask 5120  }
0x1db6   :  { %v1923_v1 = vpop.f32.mrb[20].mxu0  ;;  %v1997_v14 = vpop.f32.mrb[22].mxu1 }
0x1db7   :  { %v2001_v52 = vmul.f32 2.0, %v1923_v1  ;;  %2005 = vperm.xlu0 %2278, %v1997_v14   ;;  %v2272_v53 = vpop.f32.mrb[23].mxu1  ;;  %v2267_v54 = vpop.f32.mrb[21].mxu0 }
0x1db9   :  { %v2002_v55 = vsub.f32 %v2411_v16, %v2001_v52 }
0x1e36   :  { %v2006_v56 = vpop.permute.xlu0 %2005 }
0x1e37   :  { %v2008_v57 = vadd.f32 %v2006_v56, %v2002_v55 }
0x1e39   :  { %v2009_v58 = vmin.f32 %v1750_v28, %v2008_v57 }
0x1e3b   :  { %v2010_v59 = vsel %vm455_vm15, %v2009_v58, -inf }
0x1e3c   :  { %2011 = vmax.xlane.f32.xlu1 %v2010_v59 }
0x1ec9   :  { %v2012_v60 = vpop.xlane.xlu1 %2011 }
0x1eca   :  { %vm2013_vm0 = vcmp.eq.f32.partialorder %v2009_v58, %v2012_v60 }
0x1ecb   :  { %v2014_v61 = vsel %vm2013_vm0, %v2374_v4, 16 }
0x1ecc   :  { %v2015_v10 = vsel %vm455_vm15, %v2014_v61, 2147483647 }
0x1ecd   :  { %v2017_v62 = vshra.s32 %v2015_v10, 16  ;;  %v2016_v0 = vand.u32 65535, %v2015_v10 }
0x1ecf   :  { %v2019_v63 = vcvt.s32.f32 %v2017_v62  ;;  %v2018_v3 = vcvt.s32.f32 %v2016_v0 }
0x1ed1   :  { %2020 = vmin.xlane.f32.xlu0 %v2019_v63 }
0x1f5e   :  { %v2021_v2 = vpop.xlane.xlu0 %2020 }
0x1f5f   :  { %vm2022_vm1 = vcmp.eq.f32.partialorder %v2019_v63, %v2021_v2  ;;  %v2027_v7 = vcvt.f32.s32 %v2021_v2 }
0x1f60   :  { %v2023_v16 = vsel %vm2022_vm1, %v2018_v3, inf }
0x1f61   :  { %2024 = vmin.xlane.f32.xlu1 %v2023_v16  ;;  %v2028_v9 = vshll.u32 %v2027_v7, 16 }
0x1f65   :  { %106 = vadd.xlane.f32.xlu1 %v105_v5 }
0x1fee   :  { %v2025_v8 = vpop.xlane.xlu1 %2024 }
0x1fef   :  { %v2026_v11 = vcvt.f32.s32 %v2025_v8 }
0x1ff1   :  { %v2029_v12 = vadd.s32 %v2028_v9, %v2026_v11 }
0x1ff2   :  { %v107_v15 = vpop.xlane.xlu1 %106 }
0x1ff3   :  { %109 = vst.msk [vmem:[%s2626_s4] sm:$0x3f] %vm108_vm4, %v107_v15  ;;  %v2031_v17 = vsel %vm2030_vm9, %v2029_v12, %v1772_v43 }
0x1ff4   :  { %2033 = vst.msk [vmem:[#allocation5] sm:$0x3] %vm2032_vm11, %v2031_v17 }
0x1ff5   :  { %2313 = shalt.err (!%p2310_p12)
}
0x1ff6   :  { %s2314_s9 = scalar_lea.hbm %s2624_s2, 32 }
0x1ff7   :  { %p2315_p13 = scmp.ne.s32.totalorder %s2624_s2, %s2314_s9  ;;  %p2318_p0 = scmp.lt.u32.totalorder %s2314_s9, %s2624_s2 }
0x1ff9   :  { %p2320_p1 = pnand %p2318_p0, %p2315_p13 }
0x1ffb   :  { %2323 = shalt.err (!%p2320_p1)
}
0x1ffc   :  { %2043 = dma.vmem_to_hbm [thread:$0]  %s2041_s29, 32, %s2624_s2, [#allocation4]  }
0x1ffd   :  { %2326 = dma.done.wait [#allocation4], 32  }
0x1ffe   :  { %2327 = vsyncadd [#allocation4], 4294967264 }
0x1fff   :  { %2055 = vsyncpa [#allocation3], 1 }
0x2000   :  { %2056 = vsyncpa [#allocation4], 1 }

</bundles_post_ra>
